<compile_context>
chip_gen: v6e
topology: v6e:2x2x1
jax: 0.10.0
libtpu: 0.0.40
codegen_flags: <defaults>
</compile_context>

<pallas_src>
import jax
import jax.numpy as jnp
from jax.experimental import pallas as pl
from jax.experimental.pallas import tpu as pltpu


IN_FEATURES = 28 * 28   # 784 (nn.Flatten of 1x28x28)
HIDDEN = 512
NUM_CLASSES = 10
N_PAD = 128             # lane-dense classifier head (only first 10 lanes real)
TILE_B_MAX = 1024       # batch tile upper bound (~85% of HBM roofline per docs)
NEG_BIG = -1e30         # padded-class bias -> exp() == 0 after max-subtract


def _round_up(n, m):
    return (n + m - 1) // m * m


def mlp_kernel(x_ref, w1_ref, b1_ref, w2_ref, b2_ref, w3_ref, b3_ref, out_ref):
    """One batch tile of the MLP forward.

    x_ref:  (tile_b, 784) bf16
    w1_ref: (784, 512) bf16, b1_ref: (1, 512) f32
    w2_ref: (512, 512) bf16, b2_ref: (1, 512) f32
    w3_ref: (512, 128) bf16, b3_ref: (1, 128) f32 (-1e30 on padded class lanes)
    out_ref:(tile_b, 128) bf16 softmax probabilities (only [:, :10] meaningful)
    """
    x = x_ref[...]

    # Linear 1 + ReLU (bf16 operands, f32 accumulation on the MXU)
    h1 = jnp.dot(x, w1_ref[...], preferred_element_type=jnp.float32) + b1_ref[...]
    h1 = jnp.maximum(h1, 0.0).astype(jnp.bfloat16)

    # Linear 2 + ReLU
    h2 = jnp.dot(h1, w2_ref[...], preferred_element_type=jnp.float32) + b2_ref[...]
    h2 = jnp.maximum(h2, 0.0).astype(jnp.bfloat16)

    # Linear 3 (128-lane padded head; padded lanes carry bias -1e30 so they
    # vanish in the softmax -- real logits always dominate the row max)
    logits = jnp.dot(h2, w3_ref[...], preferred_element_type=jnp.float32) + b3_ref[...]

    # Numerically stable softmax over the 128-lane head (exact normalization).
    m = jnp.max(logits, axis=-1, keepdims=True)
    e = jnp.exp(logits - m)
    denom = jnp.sum(e, axis=-1, keepdims=True)
    out_ref[...] = (e / denom).astype(out_ref.dtype)


def prepare_params(params):
    """Pad + cast PyTorch-equivalent params ONCE at init (hoisted out of forward)."""
    w1, b1, w2, b2, w3, b3 = params

    w1p = w1.astype(jnp.bfloat16)                                    # (784, 512)
    w2p = w2.astype(jnp.bfloat16)                                    # (512, 512)
    w3p = (jnp.zeros((HIDDEN, N_PAD), jnp.float32)
           .at[:, :NUM_CLASSES].set(w3)).astype(jnp.bfloat16)        # (512, 128)

    b1p = b1.astype(jnp.float32)
    b2p = b2.astype(jnp.float32)
    b3p = jnp.full((1, N_PAD), NEG_BIG, jnp.float32).at[:, :NUM_CLASSES].set(b3)
    return w1p, b1p, w2p, b2p, w3p, b3p


def mlp_forward(x_nchw, prepared_params):
    """x_nchw: (B, 1, 28, 28) -> (B, 10) softmax probabilities (f32)."""
    w1p, b1p, w2p, b2p, w3p, b3p = prepared_params

    B = x_nchw.shape[0]
    x = x_nchw.reshape(B, IN_FEATURES).astype(jnp.bfloat16)   # nn.Flatten()

    # Batch tile: multiple of 16 (bf16 sublane packing), capped at TILE_B_MAX,
    # and sized so large batches give >= 2 grid steps (v7x megacore sharding
    # via dimension_semantics needs >= 2 iterations on the parallel axis).
    tile_b = min(TILE_B_MAX, _round_up(pl.cdiv(B, 2), 16))
    b_pad = _round_up(B, tile_b)
    if b_pad != B:
        x = jnp.pad(x, ((0, b_pad - B), (0, 0)))   # batch-only padding (no K pad)

    # Weights/biases use constant index maps -> resident in VMEM across all
    # grid steps (no re-DMA); only x/out tiles stream (double-buffered).
    def resident(arr):
        return pl.BlockSpec(arr.shape, lambda i: (0,) * arr.ndim)

    out = pl.pallas_call(
        mlp_kernel,
        out_shape=jax.ShapeDtypeStruct((b_pad, N_PAD), jnp.bfloat16),
        grid=(b_pad // tile_b,),
        in_specs=[
            pl.BlockSpec((tile_b, IN_FEATURES), lambda i: (i, 0)),
            resident(w1p), resident(b1p),
            resident(w2p), resident(b2p),
            resident(w3p), resident(b3p),
        ],
        out_specs=pl.BlockSpec((tile_b, N_PAD), lambda i: (i, 0)),
        compiler_params=pltpu.CompilerParams(
            dimension_semantics=("parallel",),   # shard batch tiles across v7x's 2 TCs
            vmem_limit_bytes=32 << 20,           # ~15 MiB worst case at tile_b=1024; v7x-safe
        ),
    )(x, w1p, b1p, w2p, b2p, w3p, b3p)

    return out[:B, :NUM_CLASSES].astype(jnp.float32)


def init_params(key):
    """nn.Linear default init (uniform +-1/sqrt(fan_in)); weights stored (in, out)."""
    k1, k2, k3, k4, k5, k6 = jax.random.split(key, 6)

    def lin(kw, kb, fan_in, fan_out):
        bound = 1.0 / (fan_in ** 0.5)
        w = jax.random.uniform(kw, (fan_in, fan_out), jnp.float32, -bound, bound)
        b = jax.random.uniform(kb, (1, fan_out), jnp.float32, -bound, bound)
        return w, b

    w1, b1 = lin(k1, k2, IN_FEATURES, HIDDEN)
    w2, b2 = lin(k3, k4, HIDDEN, HIDDEN)
    w3, b3 = lin(k5, k6, HIDDEN, NUM_CLASSES)
    return (w1, b1, w2, b2, w3, b3)


def reference_forward_bf16(x_nchw, params):
    """Pure-JAX reference using the same bf16-quantized inputs/weights with f32 math."""
    w1, b1, w2, b2, w3, b3 = params
    f32 = lambda a: a.astype(jnp.bfloat16).astype(jnp.float32)
    x = f32(x_nchw.reshape(x_nchw.shape[0], IN_FEATURES))
    h1 = jnp.maximum(x @ f32(w1) + b1, 0.0)
    h2 = jnp.maximum(f32(h1) @ f32(w2) + b2, 0.0)
    logits = f32(h2) @ f32(w3) + b3
    return jax.nn.softmax(logits, axis=1)


if __name__ == "__main__":
    key = jax.random.PRNGKey(0)
    kx, kp = jax.random.split(key)

    batch = 8
    x = jax.random.normal(kx, (batch, 1, 28, 28), dtype=jnp.float32)
    params = init_params(kp)
    prepared = prepare_params(params)   # hoisted: once at init, not per forward call

    out = mlp_forward(x, prepared)
    out = jax.block_until_ready(out)

    ref = reference_forward_bf16(x, params)
    assert out.shape == (batch, NUM_CLASSES)
    assert jnp.allclose(out, ref, atol=2e-2, rtol=2e-2), "mismatch vs bf16 reference"
    assert jnp.allclose(jnp.sum(out, axis=-1), 1.0, atol=2e-2), "softmax rows must sum to ~1"
    assert jnp.all(jnp.argmax(out, axis=-1) == jnp.argmax(ref, axis=-1)), "argmax mismatch"

    print("KERNEL_OK")
</pallas_src>

<mosaic_0001>
module attributes {stable_mosaic.version = 11 : i64} {
  func.func @mlp_kernel(%arg0: i32, %arg1: memref<16x784xbf16, #tpu.memory_space<vmem>>, %arg2: memref<784x512xbf16, #tpu.memory_space<vmem>>, %arg3: memref<1x512xf32, #tpu.memory_space<vmem>>, %arg4: memref<512x512xbf16, #tpu.memory_space<vmem>>, %arg5: memref<1x512xf32, #tpu.memory_space<vmem>>, %arg6: memref<512x128xbf16, #tpu.memory_space<vmem>>, %arg7: memref<1x128xf32, #tpu.memory_space<vmem>>, %arg8: memref<16x128xbf16, #tpu.memory_space<vmem>>) attributes {dimension_semantics = [#tpu.dimension_semantics<parallel>], iteration_bounds = array<i64: 1>, scalar_prefetch = 0 : i64, scratch_operands = 0 : i64, tpu.core_type = #tpu.core_type<tc>, window_params = [{transform_indices = @transform_0, window_bounds = array<i64: 16, 784>}, {pipeline_mode = #tpu.pipeline_mode<synchronous>, transform_indices = @transform_1, window_bounds = array<i64: 784, 512>}, {pipeline_mode = #tpu.pipeline_mode<synchronous>, transform_indices = @transform_2, window_bounds = array<i64: 1, 512>}, {pipeline_mode = #tpu.pipeline_mode<synchronous>, transform_indices = @transform_3, window_bounds = array<i64: 512, 512>}, {pipeline_mode = #tpu.pipeline_mode<synchronous>, transform_indices = @transform_4, window_bounds = array<i64: 1, 512>}, {pipeline_mode = #tpu.pipeline_mode<synchronous>, transform_indices = @transform_5, window_bounds = array<i64: 512, 128>}, {pipeline_mode = #tpu.pipeline_mode<synchronous>, transform_indices = @transform_6, window_bounds = array<i64: 1, 128>}, {transform_indices = @transform_7, window_bounds = array<i64: 16, 128>}]} {
    %c0 = arith.constant 0 : index
    %c0_0 = arith.constant 0 : index
    %0 = vector.load %arg1[%c0, %c0_0] : memref<16x784xbf16, #tpu.memory_space<vmem>>, vector<16x784xbf16>
    %c0_1 = arith.constant 0 : index
    %c0_2 = arith.constant 0 : index
    %1 = vector.load %arg2[%c0_1, %c0_2] : memref<784x512xbf16, #tpu.memory_space<vmem>>, vector<784x512xbf16>
    %cst = arith.constant dense<0.000000e+00> : vector<16x512xf32>
    %2 = tpu.matmul %0, %1, %cst {dimension_numbers = #tpu.dot_dimension_numbers<[1], [0], [0], [1], [0, 0, 1, 1], [], []>} : vector<16x784xbf16>, vector<784x512xbf16>, vector<16x512xf32> -> vector<16x512xf32>
    %c0_3 = arith.constant 0 : index
    %c0_4 = arith.constant 0 : index
    %3 = vector.load %arg3[%c0_3, %c0_4] : memref<1x512xf32, #tpu.memory_space<vmem>>, vector<1x512xf32>
    %4 = vector.broadcast %3 : vector<1x512xf32> to vector<16x512xf32>
    %5 = arith.addf %2, %4 : vector<16x512xf32>
    %cst_5 = arith.constant 0.000000e+00 : f32
    %6 = vector.broadcast %cst_5 : f32 to vector<16x512xf32>
    %7 = arith.maximumf %5, %6 : vector<16x512xf32>
    %8 = arith.truncf %7 : vector<16x512xf32> to vector<16x512xbf16>
    %c0_6 = arith.constant 0 : index
    %c0_7 = arith.constant 0 : index
    %9 = vector.load %arg4[%c0_6, %c0_7] : memref<512x512xbf16, #tpu.memory_space<vmem>>, vector<512x512xbf16>
    %cst_8 = arith.constant dense<0.000000e+00> : vector<16x512xf32>
    %10 = tpu.matmul %8, %9, %cst_8 {dimension_numbers = #tpu.dot_dimension_numbers<[1], [0], [0], [1], [0, 0, 1, 1], [], []>} : vector<16x512xbf16>, vector<512x512xbf16>, vector<16x512xf32> -> vector<16x512xf32>
    %c0_9 = arith.constant 0 : index
    %c0_10 = arith.constant 0 : index
    %11 = vector.load %arg5[%c0_9, %c0_10] : memref<1x512xf32, #tpu.memory_space<vmem>>, vector<1x512xf32>
    %12 = vector.broadcast %11 : vector<1x512xf32> to vector<16x512xf32>
    %13 = arith.addf %10, %12 : vector<16x512xf32>
    %cst_11 = arith.constant 0.000000e+00 : f32
    %14 = vector.broadcast %cst_11 : f32 to vector<16x512xf32>
    %15 = arith.maximumf %13, %14 : vector<16x512xf32>
    %16 = arith.truncf %15 : vector<16x512xf32> to vector<16x512xbf16>
    %c0_12 = arith.constant 0 : index
    %c0_13 = arith.constant 0 : index
    %17 = vector.load %arg6[%c0_12, %c0_13] : memref<512x128xbf16, #tpu.memory_space<vmem>>, vector<512x128xbf16>
    %cst_14 = arith.constant dense<0.000000e+00> : vector<16x128xf32>
    %18 = tpu.matmul %16, %17, %cst_14 {dimension_numbers = #tpu.dot_dimension_numbers<[1], [0], [0], [1], [0, 0, 1, 1], [], []>} : vector<16x512xbf16>, vector<512x128xbf16>, vector<16x128xf32> -> vector<16x128xf32>
    %c0_15 = arith.constant 0 : index
    %c0_16 = arith.constant 0 : index
    %19 = vector.load %arg7[%c0_15, %c0_16] : memref<1x128xf32, #tpu.memory_space<vmem>>, vector<1x128xf32>
    %20 = vector.broadcast %19 : vector<1x128xf32> to vector<16x128xf32>
    %21 = arith.addf %18, %20 : vector<16x128xf32>
    %cst_17 = arith.constant dense<0xFF800000> : vector<16xf32>
    %22 = vector.multi_reduction <maximumf>, %21, %cst_17 [1] : vector<16x128xf32> to vector<16xf32>
    %23 = vector.shape_cast %22 : vector<16xf32> to vector<16x1xf32>
    %24 = vector.broadcast %23 : vector<16x1xf32> to vector<16x128xf32>
    %25 = arith.subf %21, %24 : vector<16x128xf32>
    %26 = math.exp %25 : vector<16x128xf32>
    %cst_18 = arith.constant dense<0.000000e+00> : vector<16xf32>
    %27 = vector.multi_reduction <add>, %26, %cst_18 [1] : vector<16x128xf32> to vector<16xf32>
    %28 = vector.shape_cast %27 : vector<16xf32> to vector<16x1xf32>
    %29 = vector.broadcast %28 : vector<16x1xf32> to vector<16x128xf32>
    %30 = arith.divf %26, %29 : vector<16x128xf32>
    %31 = arith.truncf %30 : vector<16x128xf32> to vector<16x128xbf16>
    %c0_19 = arith.constant 0 : index
    %c0_20 = arith.constant 0 : index
    %32 = vector.load %arg8[%c0_19, %c0_20] : memref<16x128xbf16, #tpu.memory_space<vmem>>, vector<16x128xbf16>
    tpu.vector_store %arg8[%c0_19, %c0_20], %31 {strides = array<i32>} : memref<16x128xbf16, #tpu.memory_space<vmem>>, vector<16x128xbf16>,
    return
  }
  func.func @transform_0(%arg0: i32) -> (i32, i32) {
    %c0_i32 = arith.constant 0 : i32
    %c0_i32_0 = arith.constant 0 : i32
    return %arg0, %c0_i32 : i32, i32
  }
  func.func @transform_1(%arg0: i32) -> (i32, i32) {
    %c0_i32 = arith.constant 0 : i32
    %c0_i32_0 = arith.constant 0 : i32
    %c0_i32_1 = arith.constant 0 : i32
    return %c0_i32, %c0_i32_0 : i32, i32
  }
  func.func @transform_2(%arg0: i32) -> (i32, i32) {
    %c0_i32 = arith.constant 0 : i32
    %c0_i32_0 = arith.constant 0 : i32
    %c0_i32_1 = arith.constant 0 : i32
    return %c0_i32, %c0_i32_0 : i32, i32
  }
  func.func @transform_3(%arg0: i32) -> (i32, i32) {
    %c0_i32 = arith.constant 0 : i32
    %c0_i32_0 = arith.constant 0 : i32
    %c0_i32_1 = arith.constant 0 : i32
    return %c0_i32, %c0_i32_0 : i32, i32
  }
  func.func @transform_4(%arg0: i32) -> (i32, i32) {
    %c0_i32 = arith.constant 0 : i32
    %c0_i32_0 = arith.constant 0 : i32
    %c0_i32_1 = arith.constant 0 : i32
    return %c0_i32, %c0_i32_0 : i32, i32
  }
  func.func @transform_5(%arg0: i32) -> (i32, i32) {
    %c0_i32 = arith.constant 0 : i32
    %c0_i32_0 = arith.constant 0 : i32
    %c0_i32_1 = arith.constant 0 : i32
    return %c0_i32, %c0_i32_0 : i32, i32
  }
  func.func @transform_6(%arg0: i32) -> (i32, i32) {
    %c0_i32 = arith.constant 0 : i32
    %c0_i32_0 = arith.constant 0 : i32
    %c0_i32_1 = arith.constant 0 : i32
    return %c0_i32, %c0_i32_0 : i32, i32
  }
  func.func @transform_7(%arg0: i32) -> (i32, i32) {
    %c0_i32 = arith.constant 0 : i32
    %c0_i32_0 = arith.constant 0 : i32
    return %arg0, %c0_i32 : i32, i32
  }
}

</mosaic_0001>

<bundles_post_ra>
// kernel: tpu_custom_call.1
= control target key start
LH: loop header
LB: loop body
LE: loop exit
PB: predicated region body
PF: predicated region fallthrough
CT: control target
= control target key end

     0   :  { %12 = vsyncpa [#allocation3], 0  ;;  %s4302_s0 = inlined_call_operand.hbm [shape: bf16[16,784], index: 0, kind: input, shape index: {}]   ;;  %s4303_s1 = inlined_call_operand.hbm [shape: bf16[784,512], index: 1, kind: input, shape index: {}]   ;;  %s4304_s2 = inlined_call_operand.hbm [shape: f32[1,512], index: 2, kind: input, shape index: {}]   ;;  %s4305_s3 = inlined_call_operand.hbm [shape: bf16[512,512], index: 3, kind: input, shape index: {}]   ;;  %s4306_s4 = inlined_call_operand.vmem [shape: f32[1,512], index: 4, kind: input, shape index: {}]   ;;  %s4307_s5 = inlined_call_operand.hbm [shape: bf16[512,128], index: 5, kind: input, shape index: {}]   ;;  %s4308_s6 = inlined_call_operand.vmem [shape: f32[1,128], index: 6, kind: input, shape index: {}]   ;;  %s4309_s7 = inlined_call_operand.hbm [shape: bf16[16,128], index: 7, kind: output, shape index: {}]  }
   0x1   :  { %13 = vsyncpa [#allocation6], 0 }
   0x2   :  { %14 = vsyncpa [#allocation9], 0 }
   0x3   :  { %15 = vsyncpa [#allocation4], 0  ;;  %s4159_s24 = smov [#allocation5]  }
   0x4   :  { %s33_s25 = sshll.u32 %s4159_s24, 4  ;;  %s34_s25 = int_to_ptr.vmem [resolvable:$true] %s33_s25 }
   0x5   :  { %s4039_s26 = scalar_lea.vmem %s34_s25, 25088  ;;  %p4044_p1 = scmp.lt.s32.totalorder %s34_s25, %s34_s25 }
   0x6   :  { %p4040_p0 = scmp.ne.s32.totalorder %s34_s25, %s4039_s26  ;;  %p4045_p2 = scmp.lt.s32.totalorder %s4039_s26, %s4039_s26 }
   0x8   :  { %p4046_p3 = por %p4045_p2, %p4044_p1 }
   0xa   :  { %p4047_p4 = pnand %p4046_p3, %p4040_p0 }
   0xc   :  { %4050 = shalt.err (!%p4047_p4)
}
   0xd   :  { %s4160_s27 = smov 256   ;;  %s4161_s28 = smov 16  }
   0xe   :  { %39 = dma.hbm_to_vmem [thread:$0]  %s4303_s1, 25088, %s34_s25, [#allocation6], %s4160_s27, %s4160_s27, %s4161_s28  }
   0xf   :  { %s4162_s8 = smov [#allocation8]   ;;  %s4163_s10 = smov [#allocation2]  }
  0x10   :  { %s55_s9 = sshll.u32 %s4162_s8, 4  ;;  %s21_s11 = sshll.u32 %s4163_s10, 4  ;;  %s56_s9 = int_to_ptr.vmem [resolvable:$true] %s55_s9  ;;  %s22_s11 = int_to_ptr.vmem [resolvable:$true] %s21_s11 }
  0x11   :  { %s4059_s12 = scalar_lea.vmem %s56_s9, 16384  ;;  %p4064_p6 = scmp.lt.s32.totalorder %s56_s9, %s56_s9 }
  0x12   :  { %p4060_p5 = scmp.ne.s32.totalorder %s56_s9, %s4059_s12  ;;  %p4065_p7 = scmp.lt.s32.totalorder %s4059_s12, %s4059_s12 }
  0x14   :  { %p4066_p8 = por %p4065_p7, %p4064_p6 }
  0x16   :  { %p4067_p9 = pnand %p4066_p8, %p4060_p5 }
  0x18   :  { %4070 = shalt.err (!%p4067_p9)
}
  0x19   :  { %61 = dma.hbm_to_vmem [thread:$0]  %s4305_s3, 16384, %s56_s9, [#allocation9], %s4160_s27, %s4160_s27, %s4161_s28  }
  0x1a   :  { %s4079_s15 = scalar_lea.vmem %s22_s11, 896  ;;  %p4084_p11 = scmp.lt.s32.totalorder %s22_s11, %s22_s11 }
  0x1b   :  { %p4080_p10 = scmp.ne.s32.totalorder %s22_s11, %s4079_s15  ;;  %p4085_p12 = scmp.lt.s32.totalorder %s4079_s15, %s4079_s15 }
  0x1d   :  { %p4086_p13 = por %p4085_p12, %p4084_p11 }
  0x1f   :  { %p4087_p0 = pnand %p4086_p13, %p4080_p10 }
  0x21   :  { %4090 = shalt.err (!%p4087_p0)
}
  0x22   :  { %s4164_s1 = smov 448   ;;  %s4165_s16 = smov 28  }
  0x23   :  { %27 = dma.hbm_to_vmem [thread:$0]  %s4302_s0, 896, %s22_s11, [#allocation3], %s4164_s1, %s4164_s1, %s4165_s16  }
  0x24   :  { %s4166_s19 = smov [#allocation7]   ;;  %s4167_s21 = smov [#allocation10]  }
  0x25   :  { %s46_s20 = sshll.u32 %s4166_s19, 4  ;;  %s69_s22 = sshll.u32 %s4167_s21, 4  ;;  %s47_s20 = int_to_ptr.vmem [resolvable:$true] %s46_s20  ;;  %s70_s22 = int_to_ptr.vmem [resolvable:$true] %s69_s22 }
  0x26   :  { %s4099_s3 = scalar_lea.vmem %s47_s20, 64  ;;  %p4104_p2 = scmp.lt.s32.totalorder %s47_s20, %s47_s20 }
  0x27   :  { %p4100_p1 = scmp.ne.s32.totalorder %s47_s20, %s4099_s3  ;;  %p4105_p3 = scmp.lt.s32.totalorder %s4099_s3, %s4099_s3 }
  0x29   :  { %p4106_p4 = por %p4105_p3, %p4104_p2 }
  0x2b   :  { %p4107_p5 = pnand %p4106_p4, %p4100_p1 }
  0x2d   :  { %4110 = shalt.err (!%p4107_p5)
}
  0x2e   :  { %49 = dma.hbm_to_vmem [thread:$0]  %s4304_s2, 64, %s47_s20, [#allocation6]  }
  0x2f   :  { %s4119_s25 = scalar_lea.vmem %s70_s22, 4096  ;;  %p4124_p7 = scmp.lt.s32.totalorder %s70_s22, %s70_s22 }
  0x30   :  { %p4120_p6 = scmp.ne.s32.totalorder %s70_s22, %s4119_s25  ;;  %p4125_p8 = scmp.lt.s32.totalorder %s4119_s25, %s4119_s25 }
  0x32   :  { %p4126_p9 = por %p4125_p8, %p4124_p7 }
  0x34   :  { %p4127_p10 = pnand %p4126_p9, %p4120_p6 }
  0x36   :  { %4130 = shalt.err (!%p4127_p10)
}
  0x37   :  { %s4168_s0 = smov 64   ;;  %s4169_s26 = smov 4  }
  0x38   :  { %75 = dma.hbm_to_vmem [thread:$0]  %s4307_s5, 4096, %s70_s22, [#allocation9], %s4168_s0, %s4168_s0, %s4169_s26  }
  0x39   :  { %4151 = dma.done.wait [#allocation3], 896  }
  0x3a   :  { %4152 = vsyncadd [#allocation3], 4294966400 }
  0x3b   :  { %4153 = dma.done.wait [#allocation6], 25152  }
  0x3c   :  { %4154 = vsyncadd [#allocation6], 4294942144 }
  0x3d   :  { %4155 = dma.done.wait [#allocation9], 20480  }
  0x3e   :  { %4156 = vsyncadd [#allocation9], 4294946816  ;;  %v3493_v0 = vld [vmem:[#allocation5 + $0xe4] ss:$16 sps:$4 sm:$0xff]   ;;  %v3497_v2 = vld [vmem:[#allocation5 + $0xe0] ss:$16 sps:$4 sm:$0xff]  }
  0x3f   :  { %v3495_v1 = vld [vmem:[#allocation5 + $0x2e4] ss:$16 sps:$4 sm:$0xff]   ;;  %1339 = vmatprep.subr.bf16.mxu0 %v3493_v0  ;;  %v3498_v3 = vld [vmem:[#allocation5 + $0x2e0] ss:$16 sps:$4 sm:$0xff]   ;;  %v4230_v49 = vld [vmem:[#allocation2 + $0x4] ss:$28 sps:$4 sm:$0xff]  }
  0x40   :  { %1382 = vmatprep.subr.bf16.mxu1 %v3495_v1  ;;  %v3499_v4 = vld [vmem:[#allocation5 + $0xc4] ss:$16 sps:$4 sm:$0xff]   ;;  %1340 = vmatpush1.bf16.msra.mxu0 %v3497_v2  ;;  %v3503_v6 = vld [vmem:[#allocation5 + $0xc0] ss:$16 sps:$4 sm:$0xff]   ;;  %vm1335_vm0 = vcmask 130048  }
  0x41   :  { %1383 = vmatpush1.bf16.msra.mxu1 %v3498_v3  ;;  %v3501_v5 = vld [vmem:[#allocation5 + $0x2c4] ss:$16 sps:$4 sm:$0xff]   ;;  %1341 = vmatprep.subr.bf16.mxu0 %v3499_v4  ;;  %v3504_v7 = vld [vmem:[#allocation5 + $0x2c0] ss:$16 sps:$4 sm:$0xff]  }
  0x42   :  { %1384 = vmatprep.subr.bf16.mxu1 %v3501_v5  ;;  %v3505_v8 = vld [vmem:[#allocation5 + $0xa4] ss:$16 sps:$4 sm:$0xff]   ;;  %v3509_v10 = vld [vmem:[#allocation5 + $0xa0] ss:$16 sps:$4 sm:$0xff]   ;;  %1371 = vmatprep.mubr.bf16.mxu0 %v4230_v49 }
  0x43   :  { %v3507_v9 = vld [vmem:[#allocation5 + $0x2a4] ss:$16 sps:$4 sm:$0xff]   ;;  %v3510_v11 = vld [vmem:[#allocation5 + $0x2a0] ss:$16 sps:$4 sm:$0xff]  }
  0x44   :  { %1342 = vmatpush1.bf16.msra.mxu0 %v3503_v6  ;;  %v3511_v12 = vld [vmem:[#allocation5 + $0x84] ss:$16 sps:$4 sm:$0xff]   ;;  %v3515_v14 = vld [vmem:[#allocation5 + $0x80] ss:$16 sps:$4 sm:$0xff]  }
  0x45   :  { %1385 = vmatpush1.bf16.msra.mxu1 %v3504_v7  ;;  %1343 = vmatprep.subr.bf16.mxu0 %v3505_v8  ;;  %v3513_v13 = vld [vmem:[#allocation5 + $0x284] ss:$16 sps:$4 sm:$0xff]   ;;  %v3516_v15 = vld [vmem:[#allocation5 + $0x280] ss:$16 sps:$4 sm:$0xff]  }
  0x46   :  { %1386 = vmatprep.subr.bf16.mxu1 %v3507_v9  ;;  %v3517_v16 = vld [vmem:[#allocation5 + $0x64] ss:$16 sps:$4 sm:$0xff]   ;;  %v3521_v18 = vld [vmem:[#allocation5 + $0x60] ss:$16 sps:$4 sm:$0xff]   ;;  %v3606_v9 = vld [vmem:[#allocation5 + $0xec] ss:$16 sps:$4 sm:$0xff]  }
  0x47   :  { %v3519_v17 = vld [vmem:[#allocation5 + $0x264] ss:$16 sps:$4 sm:$0xff]   ;;  %v3522_v19 = vld [vmem:[#allocation5 + $0x260] ss:$16 sps:$4 sm:$0xff]  }
  0x48   :  { %1344 = vmatpush1.bf16.msra.mxu0 %v3509_v10  ;;  %v3523_v20 = vld [vmem:[#allocation5 + $0x44] ss:$16 sps:$4 sm:$0xff]   ;;  %v3527_v22 = vld [vmem:[#allocation5 + $0x40] ss:$16 sps:$4 sm:$0xff]  }
  0x49   :  { %1387 = vmatpush1.bf16.msra.mxu1 %v3510_v11  ;;  %1345 = vmatprep.subr.bf16.mxu0 %v3511_v12  ;;  %v3525_v21 = vld [vmem:[#allocation5 + $0x244] ss:$16 sps:$4 sm:$0xff]   ;;  %v3528_v23 = vld [vmem:[#allocation5 + $0x240] ss:$16 sps:$4 sm:$0xff]   ;;  %v4170_v11 = vmov 0  }
  0x4a   :  { %1388 = vmatprep.subr.bf16.mxu1 %v3513_v13  ;;  %v3529_v24 = vld [vmem:[#allocation5 + $0x24] ss:$16 sps:$4 sm:$0xff]   ;;  %v3533_v26 = vld [vmem:[#allocation5 + $0x20] ss:$16 sps:$4 sm:$0xff]   ;;  %v3604_v13 = vld [vmem:[#allocation5 + $0xe8] ss:$16 sps:$4 sm:$0xff]  }
  0x4b   :  { %v3531_v25 = vld [vmem:[#allocation5 + $0x224] ss:$16 sps:$4 sm:$0xff]   ;;  %v3534_v27 = vld [vmem:[#allocation5 + $0x220] ss:$16 sps:$4 sm:$0xff]  }
  0x4c   :  { %1346 = vmatpush1.bf16.msra.mxu0 %v3515_v14  ;;  %v3535_v28 = vld [vmem:[#allocation5 + $0x4] ss:$16 sps:$4 sm:$0xff]   ;;  %v3539_v30 = vld [vmem:[#allocation5] ss:$16 sps:$4 sm:$0xff]  }
  0x4d   :  { %1389 = vmatpush1.bf16.msra.mxu1 %v3516_v15  ;;  %1347 = vmatprep.subr.bf16.mxu0 %v3517_v16  ;;  %v3537_v29 = vld [vmem:[#allocation5 + $0x204] ss:$16 sps:$4 sm:$0xff]   ;;  %v3540_v31 = vld [vmem:[#allocation5 + $0x200] ss:$16 sps:$4 sm:$0xff]   ;;  %v3613_v16 = vld [vmem:[#allocation5 + $0xcc] ss:$16 sps:$4 sm:$0xff]  }
  0x4e   :  { %1390 = vmatprep.subr.bf16.mxu1 %v3519_v17  ;;  %v3541_v32 = vld [vmem:[#allocation5 + $0x1e4] ss:$16 sps:$4 sm:$0xff]   ;;  %v3545_v34 = vld [vmem:[#allocation5 + $0x1e0] ss:$16 sps:$4 sm:$0xff]  }
  0x4f   :  { %v3543_v33 = vld [vmem:[#allocation5 + $0x3e4] ss:$16 sps:$4 sm:$0xff]   ;;  %v3546_v35 = vld [vmem:[#allocation5 + $0x3e0] ss:$16 sps:$4 sm:$0xff]  }
  0x50   :  { %1348 = vmatpush1.bf16.msra.mxu0 %v3521_v18  ;;  %v3547_v36 = vld [vmem:[#allocation5 + $0x1c4] ss:$16 sps:$4 sm:$0xff]   ;;  %v3551_v38 = vld [vmem:[#allocation5 + $0x1c0] ss:$16 sps:$4 sm:$0xff]   ;;  %v3611_v18 = vld [vmem:[#allocation5 + $0xc8] ss:$16 sps:$4 sm:$0xff]  }
  0x51   :  { %1391 = vmatpush1.bf16.msra.mxu1 %v3522_v19  ;;  %1349 = vmatprep.subr.bf16.mxu0 %v3523_v20  ;;  %v3549_v37 = vld [vmem:[#allocation5 + $0x3c4] ss:$16 sps:$4 sm:$0xff]   ;;  %v3552_v39 = vld [vmem:[#allocation5 + $0x3c0] ss:$16 sps:$4 sm:$0xff]   ;;  %v3619_v20 = vld [vmem:[#allocation5 + $0xac] ss:$16 sps:$4 sm:$0xff]  }
  0x52   :  { %1392 = vmatprep.subr.bf16.mxu1 %v3525_v21  ;;  %v3553_v40 = vld [vmem:[#allocation5 + $0x1a4] ss:$16 sps:$4 sm:$0xff]   ;;  %v3557_v42 = vld [vmem:[#allocation5 + $0x1a0] ss:$16 sps:$4 sm:$0xff]  }
  0x53   :  { %v3555_v41 = vld [vmem:[#allocation5 + $0x3a4] ss:$16 sps:$4 sm:$0xff]   ;;  %v3558_v43 = vld [vmem:[#allocation5 + $0x3a0] ss:$16 sps:$4 sm:$0xff]  }
  0x54   :  { %1350 = vmatpush1.bf16.msra.mxu0 %v3527_v22  ;;  %v3559_v44 = vld [vmem:[#allocation5 + $0x184] ss:$16 sps:$4 sm:$0xff]   ;;  %v3563_v46 = vld [vmem:[#allocation5 + $0x180] ss:$16 sps:$4 sm:$0xff]   ;;  %v3617_v22 = vld [vmem:[#allocation5 + $0xa8] ss:$16 sps:$4 sm:$0xff]  }
  0x55   :  { %1393 = vmatpush1.bf16.msra.mxu1 %v3528_v23  ;;  %1351 = vmatprep.subr.bf16.mxu0 %v3529_v24  ;;  %v3561_v45 = vld [vmem:[#allocation5 + $0x384] ss:$16 sps:$4 sm:$0xff]   ;;  %v3564_v47 = vld [vmem:[#allocation5 + $0x380] ss:$16 sps:$4 sm:$0xff]   ;;  %v3625_v24 = vld [vmem:[#allocation5 + $0x8c] ss:$16 sps:$4 sm:$0xff]  }
  0x56   :  { %1394 = vmatprep.subr.bf16.mxu1 %v3531_v25  ;;  %v3565_v48 = vld [vmem:[#allocation5 + $0x164] ss:$16 sps:$4 sm:$0xff]   ;;  %v3569_v52 = vld [vmem:[#allocation5 + $0x160] ss:$16 sps:$4 sm:$0xff]  }
  0x57   :  { %v3567_v50 = vld [vmem:[#allocation5 + $0x364] ss:$16 sps:$4 sm:$0xff]   ;;  %v3570_v53 = vld [vmem:[#allocation5 + $0x360] ss:$16 sps:$4 sm:$0xff]  }
  0x58   :  { %1352 = vmatpush1.bf16.msra.mxu0 %v3533_v26  ;;  %v4232_v51 = vld [vmem:[#allocation2 + $0xc] ss:$28 sps:$4 sm:$0xff]   ;;  %v4236_v4 = vld [vmem:[#allocation2] ss:$28 sps:$4 sm:$0xff]   ;;  %v3610_v14 = vld [vmem:[#allocation2 + $0x18] ss:$28 sps:$4 sm:$0xff]  }
  0x59   :  { %1395 = vmatpush1.bf16.msra.mxu1 %v3534_v27  ;;  %1353 = vmatprep.subr.bf16.mxu0 %v3535_v28  ;;  %v3571_v54 = vld [vmem:[#allocation5 + $0x144] ss:$16 sps:$4 sm:$0xff]   ;;  %v3575_v56 = vld [vmem:[#allocation5 + $0x140] ss:$16 sps:$4 sm:$0xff]   ;;  %v3623_v26 = vld [vmem:[#allocation5 + $0x88] ss:$16 sps:$4 sm:$0xff]  }
  0x5a   :  { %1396 = vmatprep.subr.bf16.mxu1 %v3537_v29  ;;  %1414 = vmatprep.mubr.bf16.mxu1 %v4232_v51  ;;  %v3573_v55 = vld [vmem:[#allocation5 + $0x344] ss:$16 sps:$4 sm:$0xff]   ;;  %v3576_v57 = vld [vmem:[#allocation5 + $0x340] ss:$16 sps:$4 sm:$0xff]   ;;  %v3631_v28 = vld [vmem:[#allocation5 + $0x6c] ss:$16 sps:$4 sm:$0xff]  }
  0x5b   :  { %v3577_v58 = vld [vmem:[#allocation5 + $0x124] ss:$16 sps:$4 sm:$0xff]   ;;  %v3581_v60 = vld [vmem:[#allocation5 + $0x120] ss:$16 sps:$4 sm:$0xff]  }
  0x5c   :  { %1354 = vmatpush1.bf16.msra.mxu0 %v3539_v30  ;;  %v3579_v59 = vld [vmem:[#allocation5 + $0x324] ss:$16 sps:$4 sm:$0xff]   ;;  %v3582_v61 = vld [vmem:[#allocation5 + $0x320] ss:$16 sps:$4 sm:$0xff]   ;;  %v3629_v30 = vld [vmem:[#allocation5 + $0x68] ss:$16 sps:$4 sm:$0xff]  }
  0x5d   :  { %1397 = vmatpush1.bf16.msra.mxu1 %v3540_v31  ;;  %1355 = vmatprep.subr.bf16.mxu0 %v3541_v32  ;;  %v3583_v62 = vld [vmem:[#allocation5 + $0x104] ss:$16 sps:$4 sm:$0xff]   ;;  %v3587_v0 = vld [vmem:[#allocation5 + $0x100] ss:$16 sps:$4 sm:$0xff]   ;;  %v3637_v32 = vld [vmem:[#allocation5 + $0x4c] ss:$16 sps:$4 sm:$0xff]  }
  0x5e   :  { %1398 = vmatprep.subr.bf16.mxu1 %v3543_v33  ;;  %v3585_v63 = vld [vmem:[#allocation5 + $0x304] ss:$16 sps:$4 sm:$0xff]   ;;  %v3588_v1 = vld [vmem:[#allocation5 + $0x300] ss:$16 sps:$4 sm:$0xff]   ;;  %v4242_v33 = vld [vmem:[#allocation2 + $0x14] ss:$28 sps:$4 sm:$0xff]  }
  0x5f   :  { %v3597_v2 = vld [vmem:[#allocation5 + $0x4e4] ss:$16 sps:$4 sm:$0xff]   ;;  %v3592_v5 = vld [vmem:[#allocation2 + $0x8] ss:$28 sps:$4 sm:$0xff]  }
  0x60   :  { %1356 = vmatpush2.bf16.msra.mxu0 %v3545_v34  ;;  %v3600_v3 = vld [vmem:[#allocation5 + $0x604] ss:$16 sps:$4 sm:$0xff]   ;;  %v3595_v6 = vld [vmem:[#allocation5 + $0x4e0] ss:$16 sps:$4 sm:$0xff]  }
  0x61   :  { %1399 = vmatpush2.bf16.msra.mxu1 %v3546_v35  ;;  %1357 = vmatprep.subr.bf16.mxu0 %v3547_v36  ;;  %v3598_v7 = vld [vmem:[#allocation5 + $0x600] ss:$16 sps:$4 sm:$0xff]   ;;  %v3603_v8 = vld [vmem:[#allocation5 + $0x4c4] ss:$16 sps:$4 sm:$0xff]   ;;  %v3635_v35 = vld [vmem:[#allocation5 + $0x48] ss:$16 sps:$4 sm:$0xff]  }
  0x62   :  { %1400 = vmatprep.subr.bf16.mxu1 %v3549_v37  ;;  %v3601_v10 = vld [vmem:[#allocation5 + $0x4c0] ss:$16 sps:$4 sm:$0xff]   ;;  %v3609_v12 = vld [vmem:[#allocation5 + $0x4a4] ss:$16 sps:$4 sm:$0xff]   ;;  %v3643_v37 = vld [vmem:[#allocation5 + $0x2c] ss:$16 sps:$4 sm:$0xff]  }
  0x63   :  { %v3607_v15 = vld [vmem:[#allocation5 + $0x4a0] ss:$16 sps:$4 sm:$0xff]   ;;  %v3616_v17 = vld [vmem:[#allocation5 + $0x484] ss:$16 sps:$4 sm:$0xff]  }
  0x64   :  { %1358 = vmatpush2.bf16.msra.mxu0 %v3551_v38  ;;  %v3614_v19 = vld [vmem:[#allocation5 + $0x480] ss:$16 sps:$4 sm:$0xff]   ;;  %v3622_v21 = vld [vmem:[#allocation5 + $0x464] ss:$16 sps:$4 sm:$0xff]  }
  0x65   :  { %1401 = vmatpush2.bf16.msra.mxu1 %v3552_v39  ;;  %1359 = vmatprep.subr.bf16.mxu0 %v3553_v40  ;;  %v3620_v23 = vld [vmem:[#allocation5 + $0x460] ss:$16 sps:$4 sm:$0xff]   ;;  %v3628_v25 = vld [vmem:[#allocation5 + $0x444] ss:$16 sps:$4 sm:$0xff]   ;;  %v3641_v39 = vld [vmem:[#allocation5 + $0x28] ss:$16 sps:$4 sm:$0xff]  }
  0x66   :  { %1402 = vmatprep.subr.bf16.mxu1 %v3555_v41  ;;  %v3626_v27 = vld [vmem:[#allocation5 + $0x440] ss:$16 sps:$4 sm:$0xff]   ;;  %v3634_v29 = vld [vmem:[#allocation5 + $0x424] ss:$16 sps:$4 sm:$0xff]   ;;  %v3649_v41 = vld [vmem:[#allocation5 + $0xc] ss:$16 sps:$4 sm:$0xff]  }
  0x67   :  { %v3632_v31 = vld [vmem:[#allocation5 + $0x420] ss:$16 sps:$4 sm:$0xff]   ;;  %v3640_v34 = vld [vmem:[#allocation5 + $0x404] ss:$16 sps:$4 sm:$0xff]  }
  0x68   :  { %1360 = vmatpush2.bf16.msra.mxu0 %v3557_v42  ;;  %v3638_v36 = vld [vmem:[#allocation5 + $0x400] ss:$16 sps:$4 sm:$0xff]   ;;  %v3646_v38 = vld [vmem:[#allocation5 + $0x5e4] ss:$16 sps:$4 sm:$0xff]  }
  0x69   :  { %1403 = vmatpush2.bf16.msra.mxu1 %v3558_v43  ;;  %1361 = vmatprep.subr.bf16.mxu0 %v3559_v44  ;;  %v3644_v40 = vld [vmem:[#allocation5 + $0x5e0] ss:$16 sps:$4 sm:$0xff]   ;;  %v3652_v42 = vld [vmem:[#allocation5 + $0x5c4] ss:$16 sps:$4 sm:$0xff]   ;;  %v3647_v43 = vld [vmem:[#allocation5 + $0x8] ss:$16 sps:$4 sm:$0xff]  }
  0x6a   :  { %1404 = vmatprep.subr.bf16.mxu1 %v3561_v45  ;;  %v3650_v44 = vld [vmem:[#allocation5 + $0x5c0] ss:$16 sps:$4 sm:$0xff]   ;;  %v3655_v45 = vld [vmem:[#allocation5 + $0x1ec] ss:$16 sps:$4 sm:$0xff]  }
  0x6c   :  { %1362 = vmatpush2.bf16.msra.mxu0 %v3563_v46  ;;  %v3658_v46 = vld [vmem:[#allocation5 + $0x5a4] ss:$16 sps:$4 sm:$0xff]  }
  0x6d   :  { %1405 = vmatpush2.bf16.msra.mxu1 %v3564_v47  ;;  %1363 = vmatprep.subr.bf16.mxu0 %v3565_v48  ;;  %v3653_v47 = vld [vmem:[#allocation5 + $0x1e8] ss:$16 sps:$4 sm:$0xff]   ;;  %v3656_v48 = vld [vmem:[#allocation5 + $0x5a0] ss:$16 sps:$4 sm:$0xff]  }
  0x6e   :  { %1406 = vmatprep.subr.bf16.mxu1 %v3567_v50  ;;  %v3664_v50 = vld [vmem:[#allocation5 + $0x584] ss:$16 sps:$4 sm:$0xff]  }
  0x70   :  { %1364 = vmatpush2.bf16.msra.mxu0 %v3569_v52  ;;  %v3659_v52 = vld [vmem:[#allocation5 + $0x1c8] ss:$16 sps:$4 sm:$0xff]  }
  0x71   :  { %1407 = vmatpush2.bf16.msra.mxu1 %v3570_v53  ;;  %1365 = vmatprep.subr.bf16.mxu0 %v3571_v54  ;;  %v3662_v53 = vld [vmem:[#allocation5 + $0x580] ss:$16 sps:$4 sm:$0xff]   ;;  %v3667_v54 = vld [vmem:[#allocation5 + $0x1ac] ss:$16 sps:$4 sm:$0xff]  }
  0x72   :  { %1408 = vmatprep.subr.bf16.mxu1 %v3573_v55  ;;  %v3670_v55 = vld [vmem:[#allocation5 + $0x564] ss:$16 sps:$4 sm:$0xff]  }
  0x74   :  { %1366 = vmatpush2.bf16.msra.mxu0 %v3575_v56  ;;  %v3665_v56 = vld [vmem:[#allocation5 + $0x1a8] ss:$16 sps:$4 sm:$0xff]  }
  0x75   :  { %1409 = vmatpush2.bf16.msra.mxu1 %v3576_v57  ;;  %1367 = vmatprep.subr.bf16.mxu0 %v3577_v58  ;;  %v3668_v57 = vld [vmem:[#allocation5 + $0x560] ss:$16 sps:$4 sm:$0xff]   ;;  %v3673_v58 = vld [vmem:[#allocation5 + $0x18c] ss:$16 sps:$4 sm:$0xff]  }
  0x76   :  { %1410 = vmatprep.subr.bf16.mxu1 %v3579_v59  ;;  %v3676_v59 = vld [vmem:[#allocation5 + $0x544] ss:$16 sps:$4 sm:$0xff]  }
  0x78   :  { %1368 = vmatpush2.bf16.msra.mxu0 %v3581_v60  ;;  %v3671_v60 = vld [vmem:[#allocation5 + $0x188] ss:$16 sps:$4 sm:$0xff]  }
  0x79   :  { %1411 = vmatpush2.bf16.msra.mxu1 %v3582_v61  ;;  %1369 = vmatprep.subr.bf16.mxu0 %v3583_v62  ;;  %v3674_v61 = vld [vmem:[#allocation5 + $0x540] ss:$16 sps:$4 sm:$0xff]   ;;  %v3679_v62 = vld [vmem:[#allocation5 + $0x16c] ss:$16 sps:$4 sm:$0xff]  }
  0x7a   :  { %1412 = vmatprep.subr.bf16.mxu1 %v3585_v63  ;;  %v3682_v63 = vld [vmem:[#allocation5 + $0x524] ss:$16 sps:$4 sm:$0xff]  }
  0x7c   :  { %1370 = vmatpush2.bf16.msra.mxu0 %v3587_v0  ;;  %v3677_v0 = vld [vmem:[#allocation5 + $0x168] ss:$16 sps:$4 sm:$0xff]  }
  0x7d   :  { %1413 = vmatpush2.bf16.msra.mxu1 %v3588_v1  ;;  %1425 = vmatprep.subr.bf16.mxu0 %v3597_v2  ;;  %v3680_v1 = vld [vmem:[#allocation5 + $0x520] ss:$16 sps:$4 sm:$0xff]   ;;  %v3685_v2 = vld [vmem:[#allocation5 + $0x14c] ss:$16 sps:$4 sm:$0xff]  }
  0x7e   :  { %1482 = vmatprep.subr.bf16.mxu1 %v3600_v3  ;;  %v3688_v3 = vld [vmem:[#allocation5 + $0x504] ss:$16 sps:$4 sm:$0xff]  }
  0x7f   :  { %1372 = vmatmul.mubr.bf16.vlgmr.msra.gmra.mxu0 %v4236_v4 }
  0x80   :  { %1415 = vmatmul.mubr.bf16.vlgmr.msra.gmra.mxu1 %v3592_v5  ;;  %1426 = vmatpush1.bf16.msra.mxu0 %v3595_v6  ;;  %v3683_v5 = vld [vmem:[#allocation5 + $0x148] ss:$16 sps:$4 sm:$0xff]   ;;  %v3686_v6 = vld [vmem:[#allocation5 + $0x500] ss:$16 sps:$4 sm:$0xff]  }
  0x81   :  { %1483 = vmatpush1.bf16.msra.mxu1 %v3598_v7  ;;  %1427 = vmatprep.subr.bf16.mxu0 %v3603_v8  ;;  %v3694_v7 = vld [vmem:[#allocation5 + $0x12c] ss:$16 sps:$4 sm:$0xff]  }
  0x82   :  { %1500 = vmatprep.mubr.bf16.mxu1 %v4170_v11  ;;  %1511 = vmatprep.subr.bf16.mxu1 %v3606_v9  ;;  %v3697_v8 = vld [vmem:[#allocation5 + $0x2ec] ss:$16 sps:$4 sm:$0xff]   ;;  %v4245_v9 = vld [vmem:[#allocation2 + $0x10] ss:$28 sps:$4 sm:$0xff]  }
  0x83   :  { %1457 = vmatprep.mubr.bf16.mxu0 %v4242_v33 }
  0x84   :  { %1428 = vmatpush1.bf16.msra.mxu0 %v3601_v10  ;;  %v3692_v10 = vld [vmem:[#allocation5 + $0x128] ss:$16 sps:$4 sm:$0xff]  }
  0x85   :  { %1429 = vmatprep.subr.bf16.mxu0 %v3609_v12  ;;  %v3695_v12 = vld [vmem:[#allocation5 + $0x2e8] ss:$16 sps:$4 sm:$0xff]  }
  0x88   :  { %3264 = vmatmul.mubr.msk.bf16.vlgmr.msra.gmra.mxu1 %vm1335_vm0, %v3610_v14  ;;  %1430 = vmatpush1.bf16.msra.mxu0 %v3607_v15  ;;  %v3703_v14 = vld [vmem:[#allocation5 + $0x2cc] ss:$16 sps:$4 sm:$0xff]   ;;  %v3698_v15 = vld [vmem:[#allocation5 + $0x108] ss:$16 sps:$4 sm:$0xff]  }
  0x89   :  { %1512 = vmatpush1.bf16.msra.mxu1 %v3604_v13  ;;  %1431 = vmatprep.subr.bf16.mxu0 %v3616_v17  ;;  %v3700_v13 = vld [vmem:[#allocation5 + $0x10c] ss:$16 sps:$4 sm:$0xff]  }
  0x8a   :  { %1513 = vmatprep.subr.bf16.mxu1 %v3613_v16  ;;  %1543 = vmatprep.mubr.bf16.mxu1 %v4230_v49  ;;  %v3661_v49 = vld [vmem:[#allocation5 + $0x1cc] ss:$16 sps:$4 sm:$0xff]   ;;  %v3701_v16 = vld [vmem:[#allocation5 + $0x2c8] ss:$16 sps:$4 sm:$0xff]  }
  0x8b   :  { %v3706_v17 = vld [vmem:[#allocation5 + $0x4ec] ss:$16 sps:$4 sm:$0xff]  }
  0x8c   :  { %1432 = vmatpush1.bf16.msra.mxu0 %v3614_v19  ;;  %v3704_v19 = vld [vmem:[#allocation5 + $0x4e8] ss:$16 sps:$4 sm:$0xff]  }
  0x8d   :  { %1514 = vmatpush1.bf16.msra.mxu1 %v3611_v18  ;;  %1433 = vmatprep.subr.bf16.mxu0 %v3622_v21  ;;  %v3709_v18 = vld [vmem:[#allocation5 + $0x2ac] ss:$16 sps:$4 sm:$0xff]  }
  0x8e   :  { %1515 = vmatprep.subr.bf16.mxu1 %v3619_v20  ;;  %v3707_v20 = vld [vmem:[#allocation5 + $0x2a8] ss:$16 sps:$4 sm:$0xff]   ;;  %v3712_v21 = vld [vmem:[#allocation5 + $0x4cc] ss:$16 sps:$4 sm:$0xff]  }
  0x90   :  { %1434 = vmatpush1.bf16.msra.mxu0 %v3620_v23  ;;  %v3710_v23 = vld [vmem:[#allocation5 + $0x4c8] ss:$16 sps:$4 sm:$0xff]  }
  0x91   :  { %1516 = vmatpush1.bf16.msra.mxu1 %v3617_v22  ;;  %1435 = vmatprep.subr.bf16.mxu0 %v3628_v25  ;;  %v3715_v22 = vld [vmem:[#allocation5 + $0x28c] ss:$16 sps:$4 sm:$0xff]  }
  0x92   :  { %1517 = vmatprep.subr.bf16.mxu1 %v3625_v24  ;;  %v3713_v24 = vld [vmem:[#allocation5 + $0x288] ss:$16 sps:$4 sm:$0xff]   ;;  %v3718_v25 = vld [vmem:[#allocation5 + $0x4ac] ss:$16 sps:$4 sm:$0xff]  }
  0x94   :  { %1436 = vmatpush1.bf16.msra.mxu0 %v3626_v27  ;;  %v3716_v27 = vld [vmem:[#allocation5 + $0x4a8] ss:$16 sps:$4 sm:$0xff]  }
  0x95   :  { %1518 = vmatpush1.bf16.msra.mxu1 %v3623_v26  ;;  %1437 = vmatprep.subr.bf16.mxu0 %v3634_v29  ;;  %v3721_v26 = vld [vmem:[#allocation5 + $0x26c] ss:$16 sps:$4 sm:$0xff]  }
  0x96   :  { %1519 = vmatprep.subr.bf16.mxu1 %v3631_v28  ;;  %v3719_v28 = vld [vmem:[#allocation5 + $0x268] ss:$16 sps:$4 sm:$0xff]   ;;  %v3727_v29 = vld [vmem:[#allocation5 + $0x24c] ss:$16 sps:$4 sm:$0xff]  }
  0x98   :  { %1438 = vmatpush1.bf16.msra.mxu0 %v3632_v31  ;;  %v3730_v31 = vld [vmem:[#allocation5 + $0x46c] ss:$16 sps:$4 sm:$0xff]  }
  0x99   :  { %1520 = vmatpush1.bf16.msra.mxu1 %v3629_v30  ;;  %1439 = vmatprep.subr.bf16.mxu0 %v3640_v34  ;;  %v3722_v30 = vld [vmem:[#allocation5 + $0x488] ss:$16 sps:$4 sm:$0xff]  }
  0x9a   :  { %1521 = vmatprep.subr.bf16.mxu1 %v3637_v32  ;;  %v3733_v32 = vld [vmem:[#allocation5 + $0x22c] ss:$16 sps:$4 sm:$0xff]   ;;  %v3728_v34 = vld [vmem:[#allocation5 + $0x468] ss:$16 sps:$4 sm:$0xff]  }
  0x9c   :  { %1440 = vmatpush1.bf16.msra.mxu0 %v3638_v36  ;;  %v3739_v36 = vld [vmem:[#allocation5 + $0x20c] ss:$16 sps:$4 sm:$0xff]  }
  0x9d   :  { %1522 = vmatpush1.bf16.msra.mxu1 %v3635_v35  ;;  %1441 = vmatprep.subr.bf16.mxu0 %v3646_v38  ;;  %v3731_v35 = vld [vmem:[#allocation5 + $0x228] ss:$16 sps:$4 sm:$0xff]  }
  0x9e   :  { %1523 = vmatprep.subr.bf16.mxu1 %v3643_v37  ;;  %v3734_v37 = vld [vmem:[#allocation5 + $0x448] ss:$16 sps:$4 sm:$0xff]  }
  0x9f   :  { %v3737_v38 = vld [vmem:[#allocation5 + $0x208] ss:$16 sps:$4 sm:$0xff]  }
  0xa0   :  { %1442 = vmatpush2.bf16.msra.mxu0 %v3644_v40  ;;  %v3745_v40 = vld [vmem:[#allocation5 + $0x3ec] ss:$16 sps:$4 sm:$0xff]  }
  0xa1   :  { %1524 = vmatpush1.bf16.msra.mxu1 %v3641_v39  ;;  %1443 = vmatprep.subr.bf16.mxu0 %v3652_v42  ;;  %v3742_v39 = vld [vmem:[#allocation5 + $0x42c] ss:$16 sps:$4 sm:$0xff]   ;;  %v3743_v42 = vld [vmem:[#allocation5 + $0x3e8] ss:$16 sps:$4 sm:$0xff]  }
  0xa2   :  { %1525 = vmatprep.subr.bf16.mxu1 %v3649_v41  ;;  %v3740_v41 = vld [vmem:[#allocation5 + $0x428] ss:$16 sps:$4 sm:$0xff]  }
  0xa4   :  { %1444 = vmatpush2.bf16.msra.mxu0 %v3650_v44  ;;  %v3751_v44 = vld [vmem:[#allocation5 + $0x3cc] ss:$16 sps:$4 sm:$0xff]  }
  0xa5   :  { %1526 = vmatpush1.bf16.msra.mxu1 %v3647_v43  ;;  %1445 = vmatprep.subr.bf16.mxu0 %v3658_v46  ;;  %v3748_v43 = vld [vmem:[#allocation5 + $0x40c] ss:$16 sps:$4 sm:$0xff]   ;;  %v3749_v46 = vld [vmem:[#allocation5 + $0x3c8] ss:$16 sps:$4 sm:$0xff]  }
  0xa6   :  { %1527 = vmatprep.subr.bf16.mxu1 %v3655_v45  ;;  %v3746_v45 = vld [vmem:[#allocation5 + $0x408] ss:$16 sps:$4 sm:$0xff]  }
  0xa8   :  { %1446 = vmatpush2.bf16.msra.mxu0 %v3656_v48  ;;  %v3757_v48 = vld [vmem:[#allocation5 + $0x3ac] ss:$16 sps:$4 sm:$0xff]  }
  0xa9   :  { %1528 = vmatpush2.bf16.msra.mxu1 %v3653_v47  ;;  %1447 = vmatprep.subr.bf16.mxu0 %v3664_v50  ;;  %v3754_v47 = vld [vmem:[#allocation5 + $0x5ec] ss:$16 sps:$4 sm:$0xff]   ;;  %v3755_v50 = vld [vmem:[#allocation5 + $0x3a8] ss:$16 sps:$4 sm:$0xff]  }
  0xaa   :  { %1529 = vmatprep.subr.bf16.mxu1 %v3661_v49  ;;  %v3752_v49 = vld [vmem:[#allocation5 + $0x5e8] ss:$16 sps:$4 sm:$0xff]  }
  0xac   :  { %1448 = vmatpush2.bf16.msra.mxu0 %v3662_v53  ;;  %v3763_v53 = vld [vmem:[#allocation5 + $0x38c] ss:$16 sps:$4 sm:$0xff]  }
  0xad   :  { %1530 = vmatpush2.bf16.msra.mxu1 %v3659_v52  ;;  %1449 = vmatprep.subr.bf16.mxu0 %v3670_v55  ;;  %v3760_v52 = vld [vmem:[#allocation5 + $0x5cc] ss:$16 sps:$4 sm:$0xff]   ;;  %v3761_v55 = vld [vmem:[#allocation5 + $0x388] ss:$16 sps:$4 sm:$0xff]  }
  0xae   :  { %1531 = vmatprep.subr.bf16.mxu1 %v3667_v54  ;;  %v3758_v54 = vld [vmem:[#allocation5 + $0x5c8] ss:$16 sps:$4 sm:$0xff]  }
  0xb0   :  { %1450 = vmatpush2.bf16.msra.mxu0 %v3668_v57  ;;  %v3769_v57 = vld [vmem:[#allocation5 + $0x36c] ss:$16 sps:$4 sm:$0xff]  }
  0xb1   :  { %1532 = vmatpush2.bf16.msra.mxu1 %v3665_v56  ;;  %1451 = vmatprep.subr.bf16.mxu0 %v3676_v59  ;;  %v3766_v56 = vld [vmem:[#allocation5 + $0x5ac] ss:$16 sps:$4 sm:$0xff]   ;;  %v3767_v59 = vld [vmem:[#allocation5 + $0x368] ss:$16 sps:$4 sm:$0xff]  }
  0xb2   :  { %1533 = vmatprep.subr.bf16.mxu1 %v3673_v58  ;;  %v3764_v58 = vld [vmem:[#allocation5 + $0x5a8] ss:$16 sps:$4 sm:$0xff]  }
  0xb4   :  { %1452 = vmatpush2.bf16.msra.mxu0 %v3674_v61  ;;  %v3775_v61 = vld [vmem:[#allocation5 + $0x34c] ss:$16 sps:$4 sm:$0xff]  }
  0xb5   :  { %1534 = vmatpush2.bf16.msra.mxu1 %v3671_v60  ;;  %1453 = vmatprep.subr.bf16.mxu0 %v3682_v63  ;;  %v3772_v60 = vld [vmem:[#allocation5 + $0x58c] ss:$16 sps:$4 sm:$0xff]   ;;  %v3773_v63 = vld [vmem:[#allocation5 + $0x348] ss:$16 sps:$4 sm:$0xff]  }
  0xb6   :  { %1535 = vmatprep.subr.bf16.mxu1 %v3679_v62  ;;  %v3770_v62 = vld [vmem:[#allocation5 + $0x588] ss:$16 sps:$4 sm:$0xff]  }
  0xb8   :  { %1454 = vmatpush2.bf16.msra.mxu0 %v3680_v1  ;;  %v3781_v1 = vld [vmem:[#allocation5 + $0x32c] ss:$16 sps:$4 sm:$0xff]  }
  0xb9   :  { %1536 = vmatpush2.bf16.msra.mxu1 %v3677_v0  ;;  %1455 = vmatprep.subr.bf16.mxu0 %v3688_v3  ;;  %v3778_v0 = vld [vmem:[#allocation5 + $0x56c] ss:$16 sps:$4 sm:$0xff]   ;;  %v3779_v3 = vld [vmem:[#allocation5 + $0x328] ss:$16 sps:$4 sm:$0xff]  }
  0xba   :  { %1537 = vmatprep.subr.bf16.mxu1 %v3685_v2  ;;  %v3776_v2 = vld [vmem:[#allocation5 + $0x568] ss:$16 sps:$4 sm:$0xff]  }
  0xbc   :  { %1456 = vmatpush2.bf16.msra.mxu0 %v3686_v6  ;;  %v3787_v6 = vld [vmem:[#allocation5 + $0x30c] ss:$16 sps:$4 sm:$0xff]  }
  0xbd   :  { %1538 = vmatpush2.bf16.msra.mxu1 %v3683_v5  ;;  %1554 = vmatprep.subr.bf16.mxu0 %v3697_v8  ;;  %v3784_v5 = vld [vmem:[#allocation5 + $0x54c] ss:$16 sps:$4 sm:$0xff]   ;;  %v3785_v8 = vld [vmem:[#allocation5 + $0x308] ss:$16 sps:$4 sm:$0xff]  }
  0xbe   :  { %1539 = vmatprep.subr.bf16.mxu1 %v3694_v7  ;;  %v3782_v7 = vld [vmem:[#allocation5 + $0x548] ss:$16 sps:$4 sm:$0xff]  }
  0xbf   :  { %1458 = vmatmul.mubr.bf16.vlgmr.msra.gmra.mxu0 %v4245_v9 }
  0xc0   :  { %1555 = vmatpush1.bf16.msra.mxu0 %v3695_v12  ;;  %1586 = vmatprep.mubr.bf16.mxu0 %v4232_v51  ;;  %v3724_v51 = vld [vmem:[#allocation5 + $0x48c] ss:$16 sps:$4 sm:$0xff]  }
  0xc1   :  { %1540 = vmatpush2.bf16.msra.mxu1 %v3692_v10  ;;  %1556 = vmatprep.subr.bf16.mxu0 %v3703_v14  ;;  %v3790_v10 = vld [vmem:[#allocation5 + $0x52c] ss:$16 sps:$4 sm:$0xff]   ;;  %v3791_v14 = vld [vmem:[#allocation5 + $0x608] ss:$16 sps:$4 sm:$0xff]  }
  0xc2   :  { %1541 = vmatprep.subr.bf16.mxu1 %v3700_v13  ;;  %v3793_v12 = vld [vmem:[#allocation5 + $0x60c] ss:$16 sps:$4 sm:$0xff]   ;;  %v3788_v13 = vld [vmem:[#allocation5 + $0x528] ss:$16 sps:$4 sm:$0xff]  }
  0xc4   :  { %1557 = vmatpush1.bf16.msra.mxu0 %v3701_v16  ;;  %v3799_v16 = vld [vmem:[#allocation8 + $0xe4] ss:$16 sps:$4 sm:$0xff]  }
  0xc5   :  { %1542 = vmatpush2.bf16.msra.mxu1 %v3698_v15  ;;  %1558 = vmatprep.subr.bf16.mxu0 %v3709_v18  ;;  %v3796_v15 = vld [vmem:[#allocation5 + $0x50c] ss:$16 sps:$4 sm:$0xff]  }
  0xc6   :  { %1597 = vmatprep.subr.bf16.mxu1 %v3706_v17  ;;  %v3794_v17 = vld [vmem:[#allocation5 + $0x508] ss:$16 sps:$4 sm:$0xff]   ;;  %v4029_v18 = vld [vmem:[#allocation2 + $0x8] ss:$28 sps:$4 sm:$0xff]  }
  0xc8   :  { %1544 = vmatmul.mubr.bf16.vlgmr.msra.gmra.mxu1 %v4236_v4  ;;  %1559 = vmatpush1.bf16.msra.mxu0 %v3707_v20  ;;  %v3725_v4 = vld [vmem:[#allocation5 + $0x248] ss:$16 sps:$4 sm:$0xff]  }
  0xc9   :  { %1598 = vmatpush1.bf16.msra.mxu1 %v3704_v19  ;;  %1560 = vmatprep.subr.bf16.mxu0 %v3715_v22  ;;  %v3797_v19 = vld [vmem:[#allocation8 + $0xe0] ss:$16 sps:$4 sm:$0xff]   ;;  %v3802_v20 = vld [vmem:[#allocation8 + $0xc4] ss:$16 sps:$4 sm:$0xff]   ;;  %v4030_v22 = vld [vmem:[#allocation2 + $0x18] ss:$28 sps:$4 sm:$0xff]  }
  0xca   :  { %1599 = vmatprep.subr.bf16.mxu1 %v3712_v21  ;;  %1629 = vmatprep.mubr.bf16.mxu1 %v4242_v33  ;;  %v3736_v33 = vld [vmem:[#allocation5 + $0x44c] ss:$16 sps:$4 sm:$0xff]   ;;  %v3800_v21 = vld [vmem:[#allocation8 + $0xc0] ss:$16 sps:$4 sm:$0xff]  }
  0xcc   :  { %1561 = vmatpush1.bf16.msra.mxu0 %v3713_v24  ;;  %v3803_v24 = vld [vmem:[#allocation8 + $0xa0] ss:$16 sps:$4 sm:$0xff]  }
  0xcd   :  { %1600 = vmatpush1.bf16.msra.mxu1 %v3710_v23  ;;  %1562 = vmatprep.subr.bf16.mxu0 %v3721_v26  ;;  %v3805_v23 = vld [vmem:[#allocation8 + $0xa4] ss:$16 sps:$4 sm:$0xff]   ;;  %v3806_v26 = vld [vmem:[#allocation8 + $0x80] ss:$16 sps:$4 sm:$0xff]  }
  0xce   :  { %1601 = vmatprep.subr.bf16.mxu1 %v3718_v25  ;;  %v3808_v25 = vld [vmem:[#allocation8 + $0x84] ss:$16 sps:$4 sm:$0xff]  }
  0xd0   :  { %1563 = vmatpush1.bf16.msra.mxu0 %v3719_v28  ;;  %v3851_v28 = vld [vmem:[#allocation8 + $0x2e0] ss:$16 sps:$4 sm:$0xff]  }
  0xd1   :  { %1602 = vmatpush1.bf16.msra.mxu1 %v3716_v27  ;;  %1564 = vmatprep.subr.bf16.mxu0 %v3727_v29  ;;  %v3809_v27 = vld [vmem:[#allocation8 + $0x60] ss:$16 sps:$4 sm:$0xff]  }
  0xd2   :  { %1603 = vmatprep.subr.bf16.mxu1 %v3724_v51  ;;  %v3853_v51 = vld [vmem:[#allocation8 + $0x2e4] ss:$16 sps:$4 sm:$0xff]   ;;  %v3812_v29 = vld [vmem:[#allocation8 + $0x40] ss:$16 sps:$4 sm:$0xff]  }
  0xd4   :  { %1565 = vmatpush1.bf16.msra.mxu0 %v3725_v4  ;;  %v3859_v4 = vld [vmem:[#allocation8 + $0x2c4] ss:$16 sps:$4 sm:$0xff]  }
  0xd5   :  { %1604 = vmatpush1.bf16.msra.mxu1 %v3722_v30  ;;  %1566 = vmatprep.subr.bf16.mxu0 %v3733_v32  ;;  %v3857_v30 = vld [vmem:[#allocation8 + $0x2c0] ss:$16 sps:$4 sm:$0xff]  }
  0xd6   :  { %1605 = vmatprep.subr.bf16.mxu1 %v3730_v31  ;;  %v3817_v31 = vld [vmem:[#allocation8 + $0x24] ss:$16 sps:$4 sm:$0xff]   ;;  %v3815_v32 = vld [vmem:[#allocation8 + $0x20] ss:$16 sps:$4 sm:$0xff]  }
  0xd8   :  { %1567 = vmatpush1.bf16.msra.mxu0 %v3731_v35  ;;  %v3865_v35 = vld [vmem:[#allocation8 + $0x2a4] ss:$16 sps:$4 sm:$0xff]  }
  0xd9   :  { %1606 = vmatpush1.bf16.msra.mxu1 %v3728_v34  ;;  %1568 = vmatprep.subr.bf16.mxu0 %v3739_v36  ;;  %v3863_v34 = vld [vmem:[#allocation8 + $0x2a0] ss:$16 sps:$4 sm:$0xff]  }
  0xda   :  { %1607 = vmatprep.subr.bf16.mxu1 %v3736_v33  ;;  %v3820_v33 = vld [vmem:[#allocation8 + $0x4] ss:$16 sps:$4 sm:$0xff]   ;;  %v3818_v36 = vld [vmem:[#allocation8] ss:$16 sps:$4 sm:$0xff]  }
  0xdc   :  { %1569 = vmatpush1.bf16.msra.mxu0 %v3737_v38  ;;  %v3871_v38 = vld [vmem:[#allocation8 + $0x284] ss:$16 sps:$4 sm:$0xff]  }
  0xdd   :  { %1608 = vmatpush1.bf16.msra.mxu1 %v3734_v37  ;;  %1570 = vmatprep.subr.bf16.mxu0 %v3745_v40  ;;  %v3869_v37 = vld [vmem:[#allocation8 + $0x280] ss:$16 sps:$4 sm:$0xff]  }
  0xde   :  { %1609 = vmatprep.subr.bf16.mxu1 %v3742_v39  ;;  %v3823_v39 = vld [vmem:[#allocation8 + $0x1e4] ss:$16 sps:$4 sm:$0xff]   ;;  %v3821_v40 = vld [vmem:[#allocation8 + $0x1e0] ss:$16 sps:$4 sm:$0xff]  }
  0xe0   :  { %1571 = vmatpush2.bf16.msra.mxu0 %v3743_v42  ;;  %v3877_v42 = vld [vmem:[#allocation8 + $0x264] ss:$16 sps:$4 sm:$0xff]  }
  0xe1   :  { %1610 = vmatpush1.bf16.msra.mxu1 %v3740_v41  ;;  %1572 = vmatprep.subr.bf16.mxu0 %v3751_v44  ;;  %v3875_v41 = vld [vmem:[#allocation8 + $0x260] ss:$16 sps:$4 sm:$0xff]  }
  0xe2   :  { %1611 = vmatprep.subr.bf16.mxu1 %v3748_v43  ;;  %v3826_v43 = vld [vmem:[#allocation8 + $0x1c4] ss:$16 sps:$4 sm:$0xff]   ;;  %v3824_v44 = vld [vmem:[#allocation8 + $0x1c0] ss:$16 sps:$4 sm:$0xff]  }
  0xe4   :  { %1573 = vmatpush2.bf16.msra.mxu0 %v3749_v46  ;;  %v3883_v46 = vld [vmem:[#allocation8 + $0x244] ss:$16 sps:$4 sm:$0xff]  }
  0xe5   :  { %1612 = vmatpush1.bf16.msra.mxu1 %v3746_v45  ;;  %1574 = vmatprep.subr.bf16.mxu0 %v3757_v48  ;;  %v3881_v45 = vld [vmem:[#allocation8 + $0x240] ss:$16 sps:$4 sm:$0xff]  }
  0xe6   :  { %1613 = vmatprep.subr.bf16.mxu1 %v3754_v47  ;;  %v3829_v47 = vld [vmem:[#allocation8 + $0x1a4] ss:$16 sps:$4 sm:$0xff]   ;;  %v3827_v48 = vld [vmem:[#allocation8 + $0x1a0] ss:$16 sps:$4 sm:$0xff]  }
  0xe8   :  { %1575 = vmatpush2.bf16.msra.mxu0 %v3755_v50  ;;  %v3889_v50 = vld [vmem:[#allocation8 + $0x224] ss:$16 sps:$4 sm:$0xff]  }
  0xe9   :  { %1614 = vmatpush2.bf16.msra.mxu1 %v3752_v49  ;;  %1576 = vmatprep.subr.bf16.mxu0 %v3763_v53  ;;  %v3887_v49 = vld [vmem:[#allocation8 + $0x220] ss:$16 sps:$4 sm:$0xff]  }
  0xea   :  { %1615 = vmatprep.subr.bf16.mxu1 %v3760_v52  ;;  %v3832_v52 = vld [vmem:[#allocation8 + $0x184] ss:$16 sps:$4 sm:$0xff]   ;;  %v3830_v53 = vld [vmem:[#allocation8 + $0x180] ss:$16 sps:$4 sm:$0xff]  }
  0xec   :  { %1577 = vmatpush2.bf16.msra.mxu0 %v3761_v55  ;;  %v3895_v55 = vld [vmem:[#allocation8 + $0x204] ss:$16 sps:$4 sm:$0xff]  }
  0xed   :  { %1616 = vmatpush2.bf16.msra.mxu1 %v3758_v54  ;;  %1578 = vmatprep.subr.bf16.mxu0 %v3769_v57  ;;  %v3893_v54 = vld [vmem:[#allocation8 + $0x200] ss:$16 sps:$4 sm:$0xff]  }
  0xee   :  { %1617 = vmatprep.subr.bf16.mxu1 %v3766_v56  ;;  %v3835_v56 = vld [vmem:[#allocation8 + $0x164] ss:$16 sps:$4 sm:$0xff]   ;;  %v3833_v57 = vld [vmem:[#allocation8 + $0x160] ss:$16 sps:$4 sm:$0xff]  }
  0xf0   :  { %1579 = vmatpush2.bf16.msra.mxu0 %v3767_v59  ;;  %v3901_v59 = vld [vmem:[#allocation8 + $0x3e4] ss:$16 sps:$4 sm:$0xff]  }
  0xf1   :  { %1618 = vmatpush2.bf16.msra.mxu1 %v3764_v58  ;;  %1580 = vmatprep.subr.bf16.mxu0 %v3775_v61  ;;  %v3899_v58 = vld [vmem:[#allocation8 + $0x3e0] ss:$16 sps:$4 sm:$0xff]  }
  0xf2   :  { %1619 = vmatprep.subr.bf16.mxu1 %v3772_v60  ;;  %v3838_v60 = vld [vmem:[#allocation8 + $0x144] ss:$16 sps:$4 sm:$0xff]   ;;  %v3836_v61 = vld [vmem:[#allocation8 + $0x140] ss:$16 sps:$4 sm:$0xff]  }
  0xf4   :  { %1581 = vmatpush2.bf16.msra.mxu0 %v3773_v63  ;;  %v3907_v63 = vld [vmem:[#allocation8 + $0x3c4] ss:$16 sps:$4 sm:$0xff]  }
  0xf5   :  { %1620 = vmatpush2.bf16.msra.mxu1 %v3770_v62  ;;  %1582 = vmatprep.subr.bf16.mxu0 %v3781_v1  ;;  %v3905_v62 = vld [vmem:[#allocation8 + $0x3c0] ss:$16 sps:$4 sm:$0xff]  }
  0xf6   :  { %1621 = vmatprep.subr.bf16.mxu1 %v3778_v0  ;;  %v3841_v0 = vld [vmem:[#allocation8 + $0x124] ss:$16 sps:$4 sm:$0xff]   ;;  %v3839_v1 = vld [vmem:[#allocation8 + $0x120] ss:$16 sps:$4 sm:$0xff]  }
  0xf8   :  { %1583 = vmatpush2.bf16.msra.mxu0 %v3779_v3  ;;  %v3913_v3 = vld [vmem:[#allocation8 + $0x3a4] ss:$16 sps:$4 sm:$0xff]  }
  0xf9   :  { %1622 = vmatpush2.bf16.msra.mxu1 %v3776_v2  ;;  %1584 = vmatprep.subr.bf16.mxu0 %v3787_v6  ;;  %v3911_v2 = vld [vmem:[#allocation8 + $0x3a0] ss:$16 sps:$4 sm:$0xff]  }
  0xfa   :  { %1623 = vmatprep.subr.bf16.mxu1 %v3784_v5  ;;  %v3844_v5 = vld [vmem:[#allocation8 + $0x104] ss:$16 sps:$4 sm:$0xff]   ;;  %v3842_v6 = vld [vmem:[#allocation8 + $0x100] ss:$16 sps:$4 sm:$0xff]  }
  0xfc   :  { %1585 = vmatpush2.bf16.msra.mxu0 %v3785_v8  ;;  %v3847_v8 = vld [vmem:[#allocation8 + $0xec] ss:$16 sps:$4 sm:$0xff]  }
  0xfd   :  { %1624 = vmatpush2.bf16.msra.mxu1 %v3782_v7  ;;  %1654 = vmatprep.subr.bf16.mxu0 %v3793_v12  ;;  %v3919_v7 = vld [vmem:[#allocation8 + $0x384] ss:$16 sps:$4 sm:$0xff]  }
  0xfe   :  { %1625 = vmatprep.subr.bf16.mxu1 %v3790_v10  ;;  %v3917_v10 = vld [vmem:[#allocation8 + $0x380] ss:$16 sps:$4 sm:$0xff]   ;;  %v3925_v12 = vld [vmem:[#allocation8 + $0x364] ss:$16 sps:$4 sm:$0xff]  }
  0xff   :  { %1587 = vmatmul.mubr.bf16.vlgmr.msra.gmra.mxu0 %v4029_v18  ;;  %v3940_v18 = vld [vmem:[#allocation8 + $0x304] ss:$16 sps:$4 sm:$0xff]  }
 0x100   :  { %1655 = vmatpush1.bf16.msra.mxu0 %v3791_v14  ;;  %1672 = vmatprep.mubr.bf16.mxu0 %v4170_v11  ;;  %v3811_v11 = vld [vmem:[#allocation8 + $0x64] ss:$16 sps:$4 sm:$0xff]  }
 0x101   :  { %1626 = vmatpush2.bf16.msra.mxu1 %v3788_v13  ;;  %2485 = vmatprep.subr.bf16.mxu0 %v3799_v16  ;;  %v3923_v13 = vld [vmem:[#allocation8 + $0x360] ss:$16 sps:$4 sm:$0xff]   ;;  %v3931_v14 = vld [vmem:[#allocation8 + $0x344] ss:$16 sps:$4 sm:$0xff]  }
 0x102   :  { %1627 = vmatprep.subr.bf16.mxu1 %v3796_v15  ;;  %v3929_v15 = vld [vmem:[#allocation8 + $0x340] ss:$16 sps:$4 sm:$0xff]   ;;  %v3937_v16 = vld [vmem:[#allocation8 + $0x324] ss:$16 sps:$4 sm:$0xff]  }
 0x105   :  { %1628 = vmatpush2.bf16.msra.mxu1 %v3794_v17  ;;  %v3935_v17 = vld [vmem:[#allocation8 + $0x320] ss:$16 sps:$4 sm:$0xff]  }
 0x106   :  { %2528 = vmatprep.subr.bf16.mxu1 %v3853_v51  ;;  %v4258_v51 = vld [vmem:[#allocation7] sm:$0xf] }
 0x107   :  { %3265 = vmatmul.mubr.msk.bf16.vlgmr.msra.gmra.mxu0 %vm1335_vm0, %v4030_v22  ;;  %v300_v22 = vlaneseq }
 0x108   :  { %1630 = vmatmul.mubr.bf16.vlgmr.msra.gmra.mxu1 %v4245_v9  ;;  %2486 = vmatpush1.bf16.msra.mxu0 %v3797_v19  ;;  %v3814_v9 = vld [vmem:[#allocation8 + $0x44] ss:$16 sps:$4 sm:$0xff]   ;;  %v3938_v19 = vld [vmem:[#allocation8 + $0x300] ss:$16 sps:$4 sm:$0xff]  }
 0x109   :  { %2487 = vmatprep.subr.bf16.mxu0 %v3802_v20  ;;  %2529 = vmatpush1.bf16.msra.mxu1 %v3851_v28  ;;  %v3943_v20 = vld [vmem:[#allocation8 + $0x2ec] ss:$16 sps:$4 sm:$0xff]  }
 0x10a   :  { %2530 = vmatprep.subr.bf16.mxu1 %v3859_v4 }
 0x10c   :  { %2488 = vmatpush1.bf16.msra.mxu0 %v3800_v21 }
 0x10d   :  { %2489 = vmatprep.subr.bf16.mxu0 %v3805_v23  ;;  %2531 = vmatpush1.bf16.msra.mxu1 %v3857_v30 }
 0x10e   :  { %2532 = vmatprep.subr.bf16.mxu1 %v3865_v35 }
 0x110   :  { %2490 = vmatpush1.bf16.msra.mxu0 %v3803_v24  ;;  %v4254_v24 = vshrl.u32 %v300_v22, 7  ;;  %v3902_v22 = vld [vmem:[#allocation8 + $0x1a8] ss:$16 sps:$4 sm:$0xff]  }
 0x111   :  { %2491 = vmatprep.subr.bf16.mxu0 %v3808_v25  ;;  %2533 = vmatpush1.bf16.msra.mxu1 %v3863_v34 }
 0x112   :  { %2534 = vmatprep.subr.bf16.mxu1 %v3871_v38 }
 0x114   :  { %2492 = vmatpush1.bf16.msra.mxu0 %v3806_v26 }
 0x115   :  { %2493 = vmatprep.subr.bf16.mxu0 %v3811_v11  ;;  %2535 = vmatpush1.bf16.msra.mxu1 %v3869_v37  ;;  %v306_v11 = vsub.s32 1, %v4254_v24 }
 0x116   :  { %2536 = vmatprep.subr.bf16.mxu1 %v3877_v42 }
 0x118   :  { %2494 = vmatpush1.bf16.msra.mxu0 %v3809_v27  ;;  %v302_v27 = vsub.s32 0, %v4254_v24 }
 0x119   :  { %2495 = vmatprep.subr.bf16.mxu0 %v3814_v9  ;;  %2537 = vmatpush1.bf16.msra.mxu1 %v3875_v41 }
 0x11a   :  { %2538 = vmatprep.subr.bf16.mxu1 %v3883_v46  ;;  %v303_v30 = vrot.slane %v4258_v51, %v302_v27 }
 0x11c   :  { %2496 = vmatpush1.bf16.msra.mxu0 %v3812_v29  ;;  %v307_v29 = vrot.slane %v4258_v51, %v306_v11 }
 0x11d   :  { %2497 = vmatprep.subr.bf16.mxu0 %v3817_v31  ;;  %2539 = vmatpush1.bf16.msra.mxu1 %v3881_v45 }
 0x11e   :  { %2540 = vmatprep.subr.bf16.mxu1 %v3889_v50 }
 0x120   :  { %2498 = vmatpush1.bf16.msra.mxu0 %v3815_v32 }
 0x121   :  { %2499 = vmatprep.subr.bf16.mxu0 %v3820_v33  ;;  %2541 = vmatpush1.bf16.msra.mxu1 %v3887_v49 }
 0x122   :  { %2542 = vmatprep.subr.bf16.mxu1 %v3895_v55 }
 0x124   :  { %2500 = vmatpush1.bf16.msra.mxu0 %v3818_v36 }
 0x125   :  { %2501 = vmatprep.subr.bf16.mxu0 %v3823_v39  ;;  %2543 = vmatpush1.bf16.msra.mxu1 %v3893_v54 }
 0x126   :  { %2544 = vmatprep.subr.bf16.mxu1 %v3901_v59 }
 0x128   :  { %2502 = vmatpush2.bf16.msra.mxu0 %v3821_v40 }
 0x129   :  { %2503 = vmatprep.subr.bf16.mxu0 %v3826_v43  ;;  %2545 = vmatpush2.bf16.msra.mxu1 %v3899_v58 }
 0x12a   :  { %2546 = vmatprep.subr.bf16.mxu1 %v3907_v63 }
 0x12c   :  { %2504 = vmatpush2.bf16.msra.mxu0 %v3824_v44 }
 0x12d   :  { %2505 = vmatprep.subr.bf16.mxu0 %v3829_v47  ;;  %2547 = vmatpush2.bf16.msra.mxu1 %v3905_v62  ;;  %v3845_v62 = vld [vmem:[#allocation8 + $0xe8] ss:$16 sps:$4 sm:$0xff]  }
 0x12e   :  { %2548 = vmatprep.subr.bf16.mxu1 %v3913_v3  ;;  %v3854_v3 = vld [vmem:[#allocation8 + $0xa8] ss:$16 sps:$4 sm:$0xff]  }
 0x130   :  { %2506 = vmatpush2.bf16.msra.mxu0 %v3827_v48 }
 0x131   :  { %2507 = vmatprep.subr.bf16.mxu0 %v3832_v52  ;;  %2549 = vmatpush2.bf16.msra.mxu1 %v3911_v2  ;;  %v3856_v2 = vld [vmem:[#allocation8 + $0xac] ss:$16 sps:$4 sm:$0xff]  }
 0x132   :  { %2550 = vmatprep.subr.bf16.mxu1 %v3919_v7  ;;  %v3868_v7 = vld [vmem:[#allocation8 + $0x6c] ss:$16 sps:$4 sm:$0xff]  }
 0x134   :  { %2508 = vmatpush2.bf16.msra.mxu0 %v3830_v53 }
 0x135   :  { %2509 = vmatprep.subr.bf16.mxu0 %v3835_v56  ;;  %2551 = vmatpush2.bf16.msra.mxu1 %v3917_v10  ;;  %v3874_v10 = vld [vmem:[#allocation8 + $0x4c] ss:$16 sps:$4 sm:$0xff]  }
 0x136   :  { %2552 = vmatprep.subr.bf16.mxu1 %v3925_v12  ;;  %v3872_v12 = vld [vmem:[#allocation8 + $0x48] ss:$16 sps:$4 sm:$0xff]  }
 0x138   :  { %2510 = vmatpush2.bf16.msra.mxu0 %v3833_v57 }
 0x139   :  { %2511 = vmatprep.subr.bf16.mxu0 %v3838_v60  ;;  %2553 = vmatpush2.bf16.msra.mxu1 %v3923_v13  ;;  %v3880_v13 = vld [vmem:[#allocation8 + $0x2c] ss:$16 sps:$4 sm:$0xff]  }
 0x13a   :  { %2554 = vmatprep.subr.bf16.mxu1 %v3931_v14  ;;  %v3878_v14 = vld [vmem:[#allocation8 + $0x28] ss:$16 sps:$4 sm:$0xff]  }
 0x13c   :  { %2512 = vmatpush2.bf16.msra.mxu0 %v3836_v61 }
 0x13d   :  { %2513 = vmatprep.subr.bf16.mxu0 %v3841_v0  ;;  %2555 = vmatpush2.bf16.msra.mxu1 %v3929_v15  ;;  %v3850_v0 = vld [vmem:[#allocation8 + $0xcc] ss:$16 sps:$4 sm:$0xff]  }
 0x13e   :  { %2556 = vmatprep.subr.bf16.mxu1 %v3937_v16  ;;  %v3886_v15 = vld [vmem:[#allocation8 + $0xc] ss:$16 sps:$4 sm:$0xff]   ;;  %v3884_v16 = vld [vmem:[#allocation8 + $0x8] ss:$16 sps:$4 sm:$0xff]  }
 0x13f   :  { %v1373_v25 = vpop.f32.mrf.mxu0 }
 0x140   :  { %2514 = vmatpush2.bf16.msra.mxu0 %v3839_v1  ;;  %v1416_v21 = vpop.f32.mrf.mxu1  ;;  %v1374_v34 = vadd.f32 %v1373_v25, %v303_v30  ;;  %v3848_v1 = vld [vmem:[#allocation8 + $0xc8] ss:$16 sps:$4 sm:$0xff]  }
 0x141   :  { %2515 = vmatprep.subr.bf16.mxu0 %v3844_v5  ;;  %2557 = vmatpush2.bf16.msra.mxu1 %v3935_v17  ;;  %v1375_v28 = vpop.f32.mrf.mxu0  ;;  %v3862_v5 = vld [vmem:[#allocation8 + $0x8c] ss:$16 sps:$4 sm:$0xff]   ;;  %v3908_v25 = vld [vmem:[#allocation8 + $0x188] ss:$16 sps:$4 sm:$0xff]  }
 0x142   :  { %2558 = vmatprep.subr.bf16.mxu1 %v3940_v18  ;;  %v1418_v23 = vpop.f32.mrf.mxu1  ;;  %v1376_v32 = vadd.f32 %v1375_v28, %v307_v29  ;;  %v1417_v40 = vadd.f32 %v1416_v21, %v1374_v34  ;;  %v3892_v17 = vld [vmem:[#allocation8 + $0x1ec] ss:$16 sps:$4 sm:$0xff]   ;;  %v3890_v18 = vld [vmem:[#allocation8 + $0x1e8] ss:$16 sps:$4 sm:$0xff]  }
 0x143   :  { %v1377_v4 = vpop.f32.mrf.mxu0  ;;  %v3904_v21 = vld [vmem:[#allocation8 + $0x1ac] ss:$16 sps:$4 sm:$0xff]   ;;  %v3920_v34 = vld [vmem:[#allocation8 + $0x148] ss:$16 sps:$4 sm:$0xff]  }
 0x144   :  { %2516 = vmatpush2.bf16.msra.mxu0 %v3842_v6  ;;  %v1420_v26 = vpop.f32.mrf.mxu1  ;;  %v1378_v33 = vadd.f32 %v1377_v4, %v303_v30  ;;  %v1419_v38 = vadd.f32 %v1418_v23, %v1376_v32  ;;  %v3860_v6 = vld [vmem:[#allocation8 + $0x88] ss:$16 sps:$4 sm:$0xff]   ;;  %v3910_v23 = vld [vmem:[#allocation8 + $0x18c] ss:$16 sps:$4 sm:$0xff]   ;;  %v314_v4 = vsub.s32 3, %v4254_v24 }
 0x145   :  { %2571 = vmatprep.subr.bf16.mxu0 %v3847_v8  ;;  %2559 = vmatpush2.bf16.msra.mxu1 %v3938_v19  ;;  %v1379_v35 = vpop.f32.mrf.mxu0  ;;  %v3866_v8 = vld [vmem:[#allocation8 + $0x68] ss:$16 sps:$4 sm:$0xff]   ;;  %v3898_v19 = vld [vmem:[#allocation8 + $0x1cc] ss:$16 sps:$4 sm:$0xff]  }
 0x146   :  { %2614 = vmatprep.subr.bf16.mxu1 %v3943_v20  ;;  %v1422_v9 = vpop.f32.mrf.mxu1  ;;  %v1380_v39 = vadd.f32 %v1379_v35, %v307_v29  ;;  %v1421_v42 = vadd.f32 %v1420_v26, %v1378_v33  ;;  %v3896_v20 = vld [vmem:[#allocation8 + $0x1c8] ss:$16 sps:$4 sm:$0xff]   ;;  %v3916_v28 = vld [vmem:[#allocation8 + $0x16c] ss:$16 sps:$4 sm:$0xff]  }
 0x147   :  { %v3922_v30 = vld [vmem:[#allocation8 + $0x14c] ss:$16 sps:$4 sm:$0xff]  }
 0x148   :  { %v1502_v31 = vpop.f32.mrf.mxu1  ;;  %v1423_v47 = vadd.f32 %v1422_v9, %v1380_v39  ;;  %v3914_v9 = vld [vmem:[#allocation8 + $0x168] ss:$16 sps:$4 sm:$0xff]  }
 0x14a   :  { %v1504_v36 = vpop.f32.mrf.mxu1 }
 0x14c   :  { %v1506_v44 = vpop.f32.mrf.mxu1 }
 0x14e   :  { %v1508_v54 = vpop.f32.mrf.mxu1 }
 0x17f   :  { %v1459_v37 = vpop.f32.mrf.mxu0 }
 0x180   :  { %v1460_v45 = vadd.f32 %v1459_v37, %v1417_v40  ;;  %v315_v37 = vrot.slane %v4258_v51, %v314_v4  ;;  %v3926_v40 = vld [vmem:[#allocation8 + $0x128] ss:$16 sps:$4 sm:$0xff]  }
 0x181   :  { %v1461_v41 = vpop.f32.mrf.mxu0 }
 0x182   :  { %v1462_v43 = vadd.f32 %v1461_v41, %v1419_v38  ;;  %v1503_v55 = vadd.f32 %v1502_v31, %v1460_v45  ;;  %v310_v31 = vsub.s32 2, %v4254_v24 }
 0x183   :  { %v1463_v46 = vpop.f32.mrf.mxu0 }
 0x184   :  { %v1464_v48 = vadd.f32 %v1463_v46, %v1421_v42  ;;  %v1505_v50 = vadd.f32 %v1504_v36, %v1462_v43  ;;  %v1683_v60 = vmax.f32 %v1503_v55, 0.0  ;;  %v3928_v36 = vld [vmem:[#allocation8 + $0x12c] ss:$16 sps:$4 sm:$0xff]   ;;  %v311_v38 = vrot.slane %v4258_v51, %v310_v31 }
 0x185   :  { %v1465_v49 = vpop.f32.mrf.mxu0  ;;  %v3934_v43 = vld [vmem:[#allocation8 + $0x10c] ss:$16 sps:$4 sm:$0xff]  }
 0x186   :  { %v1507_v52 = vadd.f32 %v1506_v44, %v1464_v48  ;;  %v1466_v53 = vadd.f32 %v1465_v49, %v1423_v47  ;;  %v1684_v58 = vmax.f32 %v1505_v50, 0.0  ;;  %v3932_v50 = vld [vmem:[#allocation8 + $0x108] ss:$16 sps:$4 sm:$0xff]  }
 0x188   :  { %v1509_v56 = vadd.f32 %v1508_v54, %v1466_v53  ;;  %v1687_v57 = vmax.f32 %v1507_v52, 0.0  ;;  %v1545_v26 = vpop.f32.mrf.mxu1 }
 0x189   :  { %v1546_v45 = vadd.f32 %v1545_v26, %v311_v38  ;;  %v3994_v26 = vld [vmem:[#allocation10 + $0x28] sm:$0xff]  }
 0x18a   :  { %v1688_v59 = vmax.f32 %v1509_v56, 0.0  ;;  %v4266_v63 = vpack.c.bf16 %v1687_v57, %v1683_v60  ;;  %v1547_v29 = vpop.f32.mrf.mxu1 }
 0x18b   :  { %v1548_v44 = vadd.f32 %v1547_v29, %v315_v37  ;;  %v3953_v29 = vld [vmem:[#allocation8 + $0x268] ss:$16 sps:$4 sm:$0xff]  }
 0x18c   :  { %v1692_v61 = vpack.c.bf16 %v1688_v59, %v1684_v58  ;;  %v1549_v35 = vpop.f32.mrf.mxu1 }
 0x18d   :  { %v1550_v48 = vadd.f32 %v1549_v35, %v311_v38  ;;  %v3959_v35 = vld [vmem:[#allocation8 + $0x228] ss:$16 sps:$4 sm:$0xff]  }
 0x18e   :  { %2517 = vmatprep.mubr.bf16.mxu0 %v1692_v61  ;;  %v1551_v41 = vpop.f32.mrf.mxu1  ;;  %v3965_v38 = vld [vmem:[#allocation8 + $0x3e8] ss:$16 sps:$4 sm:$0xff]  }
 0x18f   :  { %2518 = vmatmul.mubr.bf16.vlgmr.msra.gmra.mxu0 %v4266_v63  ;;  %v1552_v51 = vadd.f32 %v1551_v41, %v315_v37  ;;  %v3967_v37 = vld [vmem:[#allocation8 + $0x3ec] ss:$16 sps:$4 sm:$0xff]  }
 0x190   :  { %2572 = vmatpush1.bf16.msra.mxu0 %v3845_v62  ;;  %2603 = vmatprep.mubr.bf16.mxu0 %v1692_v61  ;;  %v3973_v41 = vld [vmem:[#allocation8 + $0x3ac] ss:$16 sps:$4 sm:$0xff]  }
 0x191   :  { %2573 = vmatprep.subr.bf16.mxu0 %v3850_v0 }
 0x194   :  { %2574 = vmatpush1.bf16.msra.mxu0 %v3848_v1 }
 0x195   :  { %2575 = vmatprep.subr.bf16.mxu0 %v3856_v2 }
 0x198   :  { %2576 = vmatpush1.bf16.msra.mxu0 %v3854_v3 }
 0x199   :  { %2577 = vmatprep.subr.bf16.mxu0 %v3862_v5 }
 0x19c   :  { %2578 = vmatpush1.bf16.msra.mxu0 %v3860_v6 }
 0x19d   :  { %2579 = vmatprep.subr.bf16.mxu0 %v3868_v7 }
 0x1a0   :  { %2580 = vmatpush1.bf16.msra.mxu0 %v3866_v8 }
 0x1a1   :  { %2581 = vmatprep.subr.bf16.mxu0 %v3874_v10 }
 0x1a4   :  { %2582 = vmatpush1.bf16.msra.mxu0 %v3872_v12 }
 0x1a5   :  { %2583 = vmatprep.subr.bf16.mxu0 %v3880_v13 }
 0x1a8   :  { %2584 = vmatpush1.bf16.msra.mxu0 %v3878_v14  ;;  %v3941_v14 = vld [vmem:[#allocation8 + $0x2e8] ss:$16 sps:$4 sm:$0xff]  }
 0x1a9   :  { %2585 = vmatprep.subr.bf16.mxu0 %v3886_v15 }
 0x1ac   :  { %2586 = vmatpush1.bf16.msra.mxu0 %v3884_v16  ;;  %v3946_v16 = vld [vmem:[#allocation8 + $0x2cc] ss:$16 sps:$4 sm:$0xff]  }
 0x1ad   :  { %2587 = vmatprep.subr.bf16.mxu0 %v3892_v17  ;;  %v3989_v17 = vld [vmem:[#allocation10 + $0x78] sm:$0xff]  }
 0x1b0   :  { %2588 = vmatpush2.bf16.msra.mxu0 %v3890_v18  ;;  %v3990_v18 = vld [vmem:[#allocation10 + $0x38] sm:$0xff]  }
 0x1b1   :  { %2589 = vmatprep.subr.bf16.mxu0 %v3898_v19  ;;  %v3991_v19 = vld [vmem:[#allocation10 + $0x70] sm:$0xff]  }
 0x1b4   :  { %2590 = vmatpush2.bf16.msra.mxu0 %v3896_v20  ;;  %v3944_v20 = vld [vmem:[#allocation8 + $0x2c8] ss:$16 sps:$4 sm:$0xff]  }
 0x1b5   :  { %2591 = vmatprep.subr.bf16.mxu0 %v3904_v21  ;;  %v3992_v21 = vld [vmem:[#allocation10 + $0x30] sm:$0xff]  }
 0x1b8   :  { %2592 = vmatpush2.bf16.msra.mxu0 %v3902_v22  ;;  %v3993_v22 = vld [vmem:[#allocation10 + $0x68] sm:$0xff]  }
 0x1b9   :  { %2593 = vmatprep.subr.bf16.mxu0 %v3910_v23  ;;  %v3947_v23 = vld [vmem:[#allocation8 + $0x2a8] ss:$16 sps:$4 sm:$0xff]  }
 0x1bc   :  { %2594 = vmatpush2.bf16.msra.mxu0 %v3908_v25  ;;  %v3952_v25 = vld [vmem:[#allocation8 + $0x28c] ss:$16 sps:$4 sm:$0xff]  }
 0x1bd   :  { %2595 = vmatprep.subr.bf16.mxu0 %v3916_v28  ;;  %v3950_v28 = vld [vmem:[#allocation8 + $0x288] ss:$16 sps:$4 sm:$0xff]  }
 0x1bf   :  { %v1588_v32 = vpop.f32.mrf.mxu0 }
 0x1c0   :  { %2596 = vmatpush2.bf16.msra.mxu0 %v3914_v9  ;;  %v1589_v52 = vadd.f32 %v1588_v32, %v1546_v45  ;;  %v3955_v9 = vld [vmem:[#allocation8 + $0x26c] ss:$16 sps:$4 sm:$0xff]   ;;  %v3956_v32 = vld [vmem:[#allocation8 + $0x248] ss:$16 sps:$4 sm:$0xff]  }
 0x1c1   :  { %v1590_v33 = vpop.f32.mrf.mxu0  ;;  %2597 = vmatprep.subr.bf16.mxu0 %v3922_v30  ;;  %v3958_v30 = vld [vmem:[#allocation8 + $0x24c] ss:$16 sps:$4 sm:$0xff]  }
 0x1c2   :  { %v1591_v49 = vadd.f32 %v1590_v33, %v1548_v44  ;;  %v3964_v33 = vld [vmem:[#allocation8 + $0x20c] ss:$16 sps:$4 sm:$0xff]   ;;  %v3974_v44 = vld [vmem:[#allocation8 + $0x388] ss:$16 sps:$4 sm:$0xff]  }
 0x1c3   :  { %v1592_v39 = vpop.f32.mrf.mxu0  ;;  %v3979_v45 = vld [vmem:[#allocation8 + $0x36c] ss:$16 sps:$4 sm:$0xff]  }
 0x1c4   :  { %2598 = vmatpush2.bf16.msra.mxu0 %v3920_v34  ;;  %v1593_v55 = vadd.f32 %v1592_v39, %v1550_v48  ;;  %v3961_v34 = vld [vmem:[#allocation8 + $0x22c] ss:$16 sps:$4 sm:$0xff]   ;;  %v3980_v48 = vld [vmem:[#allocation8 + $0x348] ss:$16 sps:$4 sm:$0xff]  }
 0x1c5   :  { %v1594_v42 = vpop.f32.mrf.mxu0  ;;  %2599 = vmatprep.subr.bf16.mxu0 %v3928_v36  ;;  %v3962_v36 = vld [vmem:[#allocation8 + $0x208] ss:$16 sps:$4 sm:$0xff]   ;;  %v3970_v39 = vld [vmem:[#allocation8 + $0x3cc] ss:$16 sps:$4 sm:$0xff]  }
 0x1c6   :  { %v1595_v60 = vadd.f32 %v1594_v42, %v1552_v51  ;;  %v3971_v42 = vld [vmem:[#allocation8 + $0x3a8] ss:$16 sps:$4 sm:$0xff]   ;;  %v3996_v51 = vld [vmem:[#allocation10 + $0x20] sm:$0xff]  }
 0x1c7   :  { %v1674_v47 = vpop.f32.mrf.mxu0 }
 0x1c8   :  { %v1631_v46 = vpop.f32.mrf.mxu1  ;;  %2600 = vmatpush2.bf16.msra.mxu0 %v3926_v40  ;;  %v3968_v40 = vld [vmem:[#allocation8 + $0x3c8] ss:$16 sps:$4 sm:$0xff]  }
 0x1c9   :  { %v1676_v54 = vpop.f32.mrf.mxu0  ;;  %2601 = vmatprep.subr.bf16.mxu0 %v3934_v43  ;;  %v1632_v57 = vadd.f32 %v1631_v46, %v1589_v52  ;;  %v3976_v43 = vld [vmem:[#allocation8 + $0x38c] ss:$16 sps:$4 sm:$0xff]   ;;  %v3977_v46 = vld [vmem:[#allocation8 + $0x368] ss:$16 sps:$4 sm:$0xff]  }
 0x1ca   :  { %v1633_v53 = vpop.f32.mrf.mxu1  ;;  %v3988_v52 = vld [vmem:[#allocation8 + $0x30c] ss:$16 sps:$4 sm:$0xff]  }
 0x1cb   :  { %v1634_v56 = vadd.f32 %v1633_v53, %v1591_v49  ;;  %v1678_v59 = vpop.f32.mrf.mxu0  ;;  %v1675_v5 = vadd.f32 %v1674_v47, %v1632_v57  ;;  %v3982_v47 = vld [vmem:[#allocation8 + $0x34c] ss:$16 sps:$4 sm:$0xff]   ;;  %v3986_v53 = vld [vmem:[#allocation8 + $0x308] ss:$16 sps:$4 sm:$0xff]   ;;  %v3999_v57 = vld [vmem:[#allocation10 + $0x50] sm:$0xff]  }
 0x1cc   :  { %v1635_v58 = vpop.f32.mrf.mxu1  ;;  %2602 = vmatpush2.bf16.msra.mxu0 %v3932_v50  ;;  %v3985_v49 = vld [vmem:[#allocation8 + $0x32c] ss:$16 sps:$4 sm:$0xff]   ;;  %v3983_v50 = vld [vmem:[#allocation8 + $0x328] ss:$16 sps:$4 sm:$0xff]  }
 0x1cd   :  { %v1636_v61 = vadd.f32 %v1635_v58, %v1593_v55  ;;  %v1680_v0 = vpop.f32.mrf.mxu0  ;;  %v1677_v1 = vadd.f32 %v1676_v54, %v1634_v56  ;;  %v1685_v12 = vmax.f32 %v1675_v5, 0.0  ;;  %3436 = vmatprep.subr.bf16.mxu0 %v3989_v17  ;;  %v3995_v54 = vld [vmem:[#allocation10 + $0x60] sm:$0xff]   ;;  %v3997_v55 = vld [vmem:[#allocation10 + $0x58] sm:$0xff]   ;;  %v4000_v58 = vld [vmem:[#allocation10 + $0x10] sm:$0xff]  }
 0x1ce   :  { %v1637_v62 = vpop.f32.mrf.mxu1  ;;  %v3998_v56 = vld [vmem:[#allocation10 + $0x18] sm:$0xff]   ;;  %v4009_v5 = vld [vmem:[#allocation10 + $0xe8] sm:$0xff]   ;;  %v4019_v17 = vld [vmem:[#allocation10 + $0xc0] sm:$0xff]  }
 0x1cf   :  { %v1679_v2 = vadd.f32 %v1678_v59, %v1636_v61  ;;  %v1638_v3 = vadd.f32 %v1637_v62, %v1595_v60  ;;  %2604 = vmatmul.mubr.bf16.vlgmr.msra.gmra.mxu0 %v4266_v63  ;;  %v1686_v8 = vmax.f32 %v1677_v1, 0.0  ;;  %v3949_v63 = vld [vmem:[#allocation8 + $0x2ac] ss:$16 sps:$4 sm:$0xff]   ;;  %v4003_v61 = vld [vmem:[#allocation10 + $0x40] sm:$0xff]  }
 0x1d0   :  { %3437 = vmatpush3.bf16.msra.mxu0 %v3990_v18  ;;  %v4001_v59 = vld [vmem:[#allocation10 + $0x48] sm:$0xff]   ;;  %v4004_v62 = vld [vmem:[#allocation10] sm:$0xff]   ;;  %v4006_v1 = vld [vmem:[#allocation10 + $0xb8] sm:$0xff]  }
 0x1d1   :  { %v1681_v6 = vadd.f32 %v1680_v0, %v1638_v3  ;;  %v1689_v7 = vmax.f32 %v1679_v2, 0.0  ;;  %3438 = vmatprep.subr.bf16.mxu0 %v3991_v19  ;;  %v4002_v60 = vld [vmem:[#allocation10 + $0x8] sm:$0xff]   ;;  %v4005_v0 = vld [vmem:[#allocation10 + $0xf8] sm:$0xff]   ;;  %v4007_v2 = vld [vmem:[#allocation10 + $0xf0] sm:$0xff]  }
 0x1d2   :  { %v4008_v3 = vld [vmem:[#allocation10 + $0xb0] sm:$0xff]   ;;  %v4020_v18 = vld [vmem:[#allocation10 + $0x80] sm:$0xff]  }
 0x1d3   :  { %v1690_v10 = vmax.f32 %v1681_v6, 0.0  ;;  %v4278_v15 = vpack.c.bf16 %v1689_v7, %v1685_v12  ;;  %v4010_v6 = vld [vmem:[#allocation10 + $0xa8] sm:$0xff]   ;;  %v4011_v7 = vld [vmem:[#allocation10 + $0xe0] sm:$0xff]   ;;  %v4014_v12 = vld [vmem:[#allocation10 + $0x98] sm:$0xff]  }
 0x1d4   :  { %3439 = vmatpush3.bf16.msra.mxu0 %v3992_v21 }
 0x1d5   :  { %v1694_v13 = vpack.c.bf16 %v1690_v10, %v1686_v8  ;;  %3440 = vmatprep.subr.bf16.mxu0 %v3993_v22  ;;  %v4012_v8 = vld [vmem:[#allocation10 + $0xa0] sm:$0xff]   ;;  %v4013_v10 = vld [vmem:[#allocation10 + $0xd8] sm:$0xff]  }
 0x1d7   :  { %2560 = vmatprep.mubr.bf16.mxu1 %v1694_v13 }
 0x1d8   :  { %2561 = vmatmul.mubr.bf16.vlgmr.msra.gmra.mxu1 %v4278_v15  ;;  %3441 = vmatpush3.bf16.msra.mxu0 %v3994_v26 }
 0x1d9   :  { %2615 = vmatpush1.bf16.msra.mxu1 %v3941_v14  ;;  %2646 = vmatprep.mubr.bf16.mxu1 %v1694_v13  ;;  %v4015_v13 = vld [vmem:[#allocation10 + $0xd0] sm:$0xff]  }
 0x1da   :  { %2616 = vmatprep.subr.bf16.mxu1 %v3946_v16  ;;  %3442 = vmatprep.subr.bf16.mxu0 %v3995_v54  ;;  %v4016_v14 = vld [vmem:[#allocation10 + $0x90] sm:$0xff]   ;;  %v4018_v16 = vld [vmem:[#allocation10 + $0x88] sm:$0xff]  }
 0x1dc   :  { %3443 = vmatpush3.bf16.msra.mxu0 %v3996_v51 }
 0x1dd   :  { %2617 = vmatpush1.bf16.msra.mxu1 %v3944_v20  ;;  %3444 = vmatprep.subr.bf16.mxu0 %v3997_v55 }
 0x1de   :  { %2618 = vmatprep.subr.bf16.mxu1 %v3949_v63  ;;  %v1823_v63 = vld [vmem:[%s4306_s4] sm:$0xf] }
 0x1df   :  { %v1832_v22 = vrot.slane %v1823_v63, %v306_v11 }
 0x1e0   :  { %3445 = vmatpush3.bf16.msra.mxu0 %v3998_v56 }
 0x1e1   :  { %2619 = vmatpush1.bf16.msra.mxu1 %v3947_v23  ;;  %3446 = vmatprep.subr.bf16.mxu0 %v3999_v57  ;;  %v1828_v23 = vrot.slane %v1823_v63, %v302_v27 }
 0x1e2   :  { %2620 = vmatprep.subr.bf16.mxu1 %v3952_v25 }
 0x1e4   :  { %3447 = vmatpush3.bf16.msra.mxu0 %v4000_v58 }
 0x1e5   :  { %2621 = vmatpush1.bf16.msra.mxu1 %v3950_v28  ;;  %3448 = vmatprep.subr.bf16.mxu0 %v4001_v59 }
 0x1e6   :  { %2622 = vmatprep.subr.bf16.mxu1 %v3955_v9 }
 0x1e8   :  { %3449 = vmatpush3.bf16.msra.mxu0 %v4002_v60 }
 0x1e9   :  { %2623 = vmatpush1.bf16.msra.mxu1 %v3953_v29  ;;  %3450 = vmatprep.subr.bf16.mxu0 %v4003_v61 }
 0x1ea   :  { %2624 = vmatprep.subr.bf16.mxu1 %v3958_v30 }
 0x1ec   :  { %3451 = vmatpush3.bf16.msra.mxu0 %v4004_v62 }
 0x1ed   :  { %2625 = vmatpush1.bf16.msra.mxu1 %v3956_v32 }
 0x1ee   :  { %2626 = vmatprep.subr.bf16.mxu1 %v3961_v34 }
 0x1f1   :  { %2627 = vmatpush1.bf16.msra.mxu1 %v3959_v35 }
 0x1f2   :  { %2628 = vmatprep.subr.bf16.mxu1 %v3964_v33 }
 0x1f5   :  { %2629 = vmatpush1.bf16.msra.mxu1 %v3962_v36 }
 0x1f6   :  { %2630 = vmatprep.subr.bf16.mxu1 %v3967_v37 }
 0x1f9   :  { %2631 = vmatpush2.bf16.msra.mxu1 %v3965_v38 }
 0x1fa   :  { %2632 = vmatprep.subr.bf16.mxu1 %v3970_v39 }
 0x1fd   :  { %2633 = vmatpush2.bf16.msra.mxu1 %v3968_v40 }
 0x1fe   :  { %2634 = vmatprep.subr.bf16.mxu1 %v3973_v41 }
 0x201   :  { %2635 = vmatpush2.bf16.msra.mxu1 %v3971_v42 }
 0x202   :  { %2636 = vmatprep.subr.bf16.mxu1 %v3976_v43 }
 0x205   :  { %2637 = vmatpush2.bf16.msra.mxu1 %v3974_v44 }
 0x206   :  { %2638 = vmatprep.subr.bf16.mxu1 %v3979_v45 }
 0x209   :  { %2639 = vmatpush2.bf16.msra.mxu1 %v3977_v46  ;;  %v1840_v46 = vrot.slane %v1823_v63, %v314_v4 }
 0x20a   :  { %2640 = vmatprep.subr.bf16.mxu1 %v3982_v47  ;;  %v1836_v47 = vrot.slane %v1823_v63, %v310_v31 }
 0x20d   :  { %2641 = vmatpush2.bf16.msra.mxu1 %v3980_v48 }
 0x20e   :  { %2642 = vmatprep.subr.bf16.mxu1 %v3985_v49 }
 0x211   :  { %2643 = vmatpush2.bf16.msra.mxu1 %v3983_v50 }
 0x212   :  { %2644 = vmatprep.subr.bf16.mxu1 %v3988_v52 }
 0x215   :  { %2645 = vmatpush2.bf16.msra.mxu1 %v3986_v53 }
 0x216   :  { %3458 = vmatprep.subr.bf16.mxu1 %v4005_v0 }
 0x218   :  { %2647 = vmatmul.mubr.bf16.vlgmr.msra.gmra.mxu1 %v4278_v15  ;;  %v4017_v15 = vld [vmem:[#allocation10 + $0xc8] sm:$0xff]  }
 0x219   :  { %3459 = vmatpush3.bf16.msra.mxu1 %v4006_v1 }
 0x21a   :  { %3460 = vmatprep.subr.bf16.mxu1 %v4007_v2 }
 0x21d   :  { %3461 = vmatpush3.bf16.msra.mxu1 %v4008_v3 }
 0x21e   :  { %3462 = vmatprep.subr.bf16.mxu1 %v4009_v5 }
 0x221   :  { %3463 = vmatpush3.bf16.msra.mxu1 %v4010_v6  ;;  %v3394_v6 = vld [vmem:[%s4308_s6] ss:$0 sm:$0xff]  ;;  %s4171_s6 = smov [#allocation11]  }
 0x222   :  { %3464 = vmatprep.subr.bf16.mxu1 %v4011_v7  ;;  %s3047_s30 = sshll.u32 %s4171_s6, 4  ;;  %s3048_s30 = int_to_ptr.vmem [resolvable:$true] %s3047_s30 }
 0x223   :  { %s4131_s8 = scalar_lea.vmem %s3048_s30, 128  ;;  %p4136_p12 = scmp.lt.s32.totalorder %s3048_s30, %s3048_s30 }
 0x224   :  { %p4132_p11 = scmp.ne.s32.totalorder %s3048_s30, %s4131_s8  ;;  %p4137_p13 = scmp.lt.s32.totalorder %s4131_s8, %s4131_s8 }
 0x225   :  { %3465 = vmatpush3.bf16.msra.mxu1 %v4012_v8 }
 0x226   :  { %3466 = vmatprep.subr.bf16.mxu1 %v4013_v10  ;;  %p4138_p0 = por %p4137_p13, %p4136_p12 }
 0x228   :  { %p4139_p1 = pnand %p4138_p0, %p4132_p11 }
 0x229   :  { %3467 = vmatpush3.bf16.msra.mxu1 %v4014_v12 }
 0x22a   :  { %3468 = vmatprep.subr.bf16.mxu1 %v4015_v13 }
 0x22d   :  { %3469 = vmatpush3.bf16.msra.mxu1 %v4016_v14 }
 0x22e   :  { %3470 = vmatprep.subr.bf16.mxu1 %v4017_v15 }
 0x231   :  { %3471 = vmatpush3.bf16.msra.mxu1 %v4018_v16 }
 0x232   :  { %3472 = vmatprep.subr.bf16.mxu1 %v4019_v17 }
 0x235   :  { %3473 = vmatpush3.bf16.msra.mxu1 %v4020_v18 }
 0x24f   :  { %v2519_v19 = vpop.f32.mrf.mxu0 }
 0x250   :  { %v2520_v30 = vadd.f32 %v2519_v19, %v1828_v23 }
 0x251   :  { %v2521_v20 = vpop.f32.mrf.mxu0 }
 0x252   :  { %v2522_v9 = vadd.f32 %v2521_v20, %v1832_v22 }
 0x253   :  { %v2523_v21 = vpop.f32.mrf.mxu0 }
 0x254   :  { %v2524_v29 = vadd.f32 %v2523_v21, %v1828_v23 }
 0x255   :  { %v2525_v26 = vpop.f32.mrf.mxu0 }
 0x256   :  { %v2526_v34 = vadd.f32 %v2525_v26, %v1832_v22 }
 0x28f   :  { %v2605_v27 = vpop.f32.mrf.mxu0 }
 0x290   :  { %v2606_v54 = vadd.f32 %v2605_v27, %v1836_v47 }
 0x291   :  { %v2607_v44 = vpop.f32.mrf.mxu0 }
 0x292   :  { %v2608_v52 = vadd.f32 %v2607_v44, %v1840_v46 }
 0x293   :  { %v2609_v45 = vpop.f32.mrf.mxu0 }
 0x294   :  { %v2610_v53 = vadd.f32 %v2609_v45, %v1836_v47 }
 0x295   :  { %v2611_v49 = vpop.f32.mrf.mxu0 }
 0x296   :  { %v2612_v55 = vadd.f32 %v2611_v49, %v1840_v46 }
 0x298   :  { %v2562_v25 = vpop.f32.mrf.mxu1 }
 0x299   :  { %v2563_v36 = vadd.f32 %v2562_v25, %v2520_v30 }
 0x29a   :  { %v2564_v28 = vpop.f32.mrf.mxu1 }
 0x29b   :  { %v2565_v35 = vadd.f32 %v2564_v28, %v2522_v9  ;;  %v2657_v11 = vmax.f32 %v2563_v36, 0.0 }
 0x29c   :  { %v2566_v32 = vpop.f32.mrf.mxu1 }
 0x29d   :  { %v2567_v33 = vadd.f32 %v2566_v32, %v2524_v29  ;;  %v2658_v40 = vmax.f32 %v2565_v35, 0.0 }
 0x29e   :  { %v2568_v37 = vpop.f32.mrf.mxu1 }
 0x29f   :  { %v2569_v38 = vadd.f32 %v2568_v37, %v2526_v34  ;;  %v2661_v39 = vmax.f32 %v2567_v33, 0.0 }
 0x2a1   :  { %v2662_v41 = vmax.f32 %v2569_v38, 0.0  ;;  %v2665_v43 = vpack.c.bf16 %v2661_v39, %v2657_v11 }
 0x2a3   :  { %v2666_v42 = vpack.c.bf16 %v2662_v41, %v2658_v40 }
 0x2a5   :  { %2964 = vmatprep.mubr.bf16.mxu0 %v2666_v42 }
 0x2a6   :  { %2965 = vmatmul.mubr.bf16.vlgmr.msra.gmra.mxu0 %v2665_v43 }
 0x2d8   :  { %v2648_v48 = vpop.f32.mrf.mxu1 }
 0x2d9   :  { %v2649_v58 = vadd.f32 %v2648_v48, %v2606_v54 }
 0x2da   :  { %v2650_v50 = vpop.f32.mrf.mxu1 }
 0x2db   :  { %v2651_v56 = vadd.f32 %v2650_v50, %v2608_v52  ;;  %v2659_v4 = vmax.f32 %v2649_v58, 0.0 }
 0x2dc   :  { %v2652_v51 = vpop.f32.mrf.mxu1 }
 0x2dd   :  { %v2653_v57 = vadd.f32 %v2652_v51, %v2610_v53  ;;  %v2660_v62 = vmax.f32 %v2651_v56, 0.0 }
 0x2de   :  { %v2654_v59 = vpop.f32.mrf.mxu1 }
 0x2df   :  { %v2655_v60 = vadd.f32 %v2654_v59, %v2612_v55  ;;  %v2663_v61 = vmax.f32 %v2653_v57, 0.0 }
 0x2e1   :  { %v2664_v0 = vmax.f32 %v2655_v60, 0.0  ;;  %v2667_v24 = vpack.c.bf16 %v2663_v61, %v2659_v4 }
 0x2e3   :  { %v2668_v1 = vpack.c.bf16 %v2664_v0, %v2660_v62 }
 0x2e5   :  { %3005 = vmatprep.mubr.bf16.mxu1 %v2668_v1 }
 0x2e6   :  { %3006 = vmatmul.mubr.bf16.vlgmr.msra.gmra.mxu1 %v2667_v24 }
 0x366   :  { %v3452_v31 = vpop.f32.mrf.mxu0 }
 0x368   :  { %v3453_v2 = vpop.f32.mrf.mxu0 }
 0x369   :  { %v3454_v5 = vadd.f32 %v3453_v2, %v3452_v31 }
 0x36a   :  { %v3455_v3 = vpop.f32.mrf.mxu0 }
 0x36b   :  { %v2967_v12 = vadd.f32 %v3454_v5, %v3394_v6 }
 0x36c   :  { %v3456_v7 = vpop.f32.mrf.mxu0 }
 0x36d   :  { %v3457_v13 = vadd.f32 %v3456_v7, %v3455_v3 }
 0x36f   :  { %v2970_v18 = vadd.f32 %v3457_v13, %v3394_v6 }
 0x3a6   :  { %v3474_v8 = vpop.f32.mrf.mxu1 }
 0x3a8   :  { %v3475_v10 = vpop.f32.mrf.mxu1 }
 0x3a9   :  { %v3476_v14 = vadd.f32 %v3475_v10, %v3474_v8 }
 0x3aa   :  { %v3477_v15 = vpop.f32.mrf.mxu1 }
 0x3ab   :  { %v3008_v16 = vadd.f32 %v3476_v14, %v2967_v12 }
 0x3ac   :  { %v3478_v17 = vpop.f32.mrf.mxu1 }
 0x3ad   :  { %v3479_v19 = vadd.f32 %v3478_v17, %v3477_v15  ;;  %3014 = vmax.xlane.f32.xlu0 %v3008_v16 }
 0x3af   :  { %v3011_v20 = vadd.f32 %v3479_v19, %v2970_v18 }
 0x3b1   :  { %3016 = vmax.xlane.f32.xlu0 %v3011_v20 }
 0x436   :  { %v3015_v63 = vpop.xlane.xlu0 %3014 }
 0x437   :  { %v3018_v21 = vsub.f32 %v3008_v16, %v3015_v63 }
 0x439   :  { %v3020_v22 = vmul.f32 1.442695, %v3018_v21 }
 0x43a   :  { %v3017_v23 = vpop.xlane.xlu0 %3016 }
 0x43b   :  { %4021 = vpow2.f32 %v3020_v22  ;;  %v3019_v25 = vsub.f32 %v3011_v20, %v3017_v23 }
 0x43d   :  { %v3022_v26 = vmul.f32 1.442695, %v3019_v25 }
 0x43f   :  { %4023 = vpow2.f32 %v3022_v26 }
 0x448   :  { %v4022_v28 = vpop.eup %4021 }
 0x449   :  { %3024 = vadd.xlane.f32.xlu1 %v4022_v28 }
 0x44c   :  { %v4024_v9 = vpop.eup %4023 }
 0x44d   :  { %3026 = vadd.xlane.f32.xlu1 %v4024_v9 }
 0x4d2   :  { %v3025_v29 = vpop.xlane.xlu1 %3024 }
 0x4d3   :  { %4025 = vrcp.f32 %v3025_v29 }
 0x4d6   :  { %v3027_v30 = vpop.xlane.xlu1 %3026 }
 0x4d7   :  { %4027 = vrcp.f32 %v3027_v30 }
 0x4e0   :  { %v4026_v32 = vpop.eup %4025 }
 0x4e1   :  { %v3029_v35 = vmul.f32 %v4026_v32, %v4022_v28 }
 0x4e4   :  { %v4028_v34 = vpop.eup %4027 }
 0x4e5   :  { %v3031_v33 = vmul.f32 %v4028_v34, %v4024_v9 }
 0x4e7   :  { %v3434_v36 = vpack.c.bf16 %v3031_v33, %v3029_v35 }
 0x4e9   :  { %3435 = vst [vmem:[#allocation11] sm:$0xff] %v3434_v36  }
 0x4ea   :  { %4142 = shalt.err (!%p4139_p1)
}
 0x4eb   :  { %3053 = dma.vmem_to_hbm [thread:$0]  %s3048_s30, 128, %s4309_s7, [#allocation4], %s4168_s0, %s4168_s0, %s4169_s26  }
 0x4ec   :  { %4157 = dma.done.wait [#allocation4], 128  }
 0x4ed   :  { %4158 = vsyncadd [#allocation4], 4294967168 }
 0x4ee   :  { %3057 = vsyncpa [#allocation3], 1 }
 0x4ef   :  { %3058 = vsyncpa [#allocation6], 1 }
 0x4f0   :  { %3059 = vsyncpa [#allocation9], 1 }
 0x4f1   :  { %3060 = vsyncpa [#allocation4], 1 }

</bundles_post_ra>
